<compile_context>
chip_gen: v6e
topology: v6e:2x2x1
jax: 0.10.0
libtpu: 0.0.40
codegen_flags: <defaults>
</compile_context>

<pallas_src>
import functools

import jax
import jax.numpy as jnp
from jax.experimental import pallas as pl
from jax.experimental.pallas import tpu as pltpu

NEG_SLOPE = 0.2  # leaky_relu negative slope (module default)


def _pick_tile(n, target=256):
    """Largest row tile <= target that divides n (multiple of 8), else n."""
    if n <= target:
        return n
    t = (target // 8) * 8
    while t >= 8:
        if n % t == 0:
            return t
        t -= 8
    return n


# ----------------------------------------------------------------------------
# Kernel 1: packed-head projection + attention terms (all MXU work).
# ----------------------------------------------------------------------------
def _project_kernel(h_ref, w_ref, al_ref, ar_ref, z_ref, el_ref, er_ref):
    # h_ref : (tile_r, Din) f32     w_ref : (Din, H*Dout) bf16
    # al_ref/ar_ref : (H*Dout, H) f32  block-diagonal attention packings
    # z_ref : (tile_r, H*Dout) bf16   el_ref/er_ref : (tile_r, H) f32
    h = h_ref[...].astype(jnp.bfloat16)
    z = jnp.dot(h, w_ref[...], preferred_element_type=jnp.float32)     # f32 acc
    el_ref[...] = jnp.dot(z, al_ref[...], preferred_element_type=jnp.float32)
    er_ref[...] = jnp.dot(z, ar_ref[...], preferred_element_type=jnp.float32)
    z_ref[...] = z.astype(jnp.bfloat16)


# ----------------------------------------------------------------------------
# Kernel 2: masked edge-softmax + aggregation, tiled over destination rows.
# ----------------------------------------------------------------------------
def _attn_kernel(z_ref, elT_ref, er_ref, adj_ref, out_ref, *,
                 heads, dout, apply_relu):
    # z_ref   : (N, H*Dout) bf16   (full src axis, shared across dst tiles)
    # elT_ref : (H, N) f32         (src attention term, src already on lanes)
    # er_ref  : (tile_n, H) f32    (dst attention term for this dst tile)
    # adj_ref : (tile_n, N) int8   adj[dst, src]
    # out_ref : (tile_n, H*Dout) f32
    m = adj_ref[...].astype(jnp.float32)          # (tile_n, N) 0/1 mask
    neg = (m - 1.0) * 1e30                        # 0 on edges, -1e30 off edges
    z = z_ref[...]
    elT = elT_ref[...]
    er = er_ref[...]

    parts = []
    for h in range(heads):
        # e[dst, src] = leaky_relu(el[src] + er[dst])
        e = elT[h:h + 1, :] + er[:, h:h + 1]                       # (tile_n, N)
        e = jnp.where(e > 0, e, NEG_SLOPE * e)
        e = e * m + neg                                            # mask (no select)
        e_max = jnp.max(e, axis=-1, keepdims=True)                 # (tile_n, 1)
        p = jnp.exp(e - e_max) * m                                 # unnormalized
        denom = jnp.sum(p, axis=-1, keepdims=True)
        inv = pl.reciprocal(jnp.maximum(denom, 1e-20), approx=True)
        z_h = z[:, h * dout:(h + 1) * dout]                        # (N, Dout) bf16
        rst = jnp.dot(p.astype(jnp.bfloat16), z_h,
                      preferred_element_type=jnp.float32) * inv    # normalize after
        if apply_relu:
            rst = jnp.maximum(rst, 0.0)
        parts.append(rst)

    out_ref[...] = jnp.concatenate(parts, axis=-1)                 # one lane-dense store


# ----------------------------------------------------------------------------
# One GATConv layer.
# ----------------------------------------------------------------------------
def gat_conv(h, w_packed, al_mat, ar_mat, adj_i8, *, heads, dout, apply_relu):
    """Returns lane-dense per-node outputs of shape (N, heads*dout)."""
    N, Din = h.shape
    HD = heads * dout

    # ---- projection + attention terms -------------------------------------
    tile_r = _pick_tile(N)
    grid_r = N // tile_r
    z, el, er = pl.pallas_call(
        _project_kernel,
        out_shape=(
            jax.ShapeDtypeStruct((N, HD), jnp.bfloat16),
            jax.ShapeDtypeStruct((N, heads), jnp.float32),
            jax.ShapeDtypeStruct((N, heads), jnp.float32),
        ),
        grid=(grid_r,),
        in_specs=[
            pl.BlockSpec((tile_r, Din), lambda i: (i, 0)),
            pl.BlockSpec((Din, HD), lambda i: (0, 0)),
            pl.BlockSpec((HD, heads), lambda i: (0, 0)),
            pl.BlockSpec((HD, heads), lambda i: (0, 0)),
        ],
        out_specs=(
            pl.BlockSpec((tile_r, HD), lambda i: (i, 0)),
            pl.BlockSpec((tile_r, heads), lambda i: (i, 0)),
            pl.BlockSpec((tile_r, heads), lambda i: (i, 0)),
        ),
        compiler_params=pltpu.CompilerParams(
            dimension_semantics=("parallel",),
            vmem_limit_bytes=64 * 1024 * 1024,
        ),
        cost_estimate=pl.CostEstimate(
            flops=2 * N * Din * HD + 4 * N * HD * heads,
            transcendentals=0,
            bytes_accessed=N * Din * 4 + Din * HD * 2 + N * HD * 2
            + 2 * HD * heads * 4 + 2 * N * heads * 4,
        ),
    )(h, w_packed, al_mat, ar_mat)

    # Tiny (N, H) -> (H, N) transpose so the src axis lands on lanes in-kernel.
    elT = el.T

    # ---- masked edge-softmax + aggregation, tiled over dst rows ------------
    tile_n = _pick_tile(N)
    grid_n = N // tile_n
    kern = functools.partial(_attn_kernel, heads=heads, dout=dout,
                             apply_relu=apply_relu)
    out = pl.pallas_call(
        kern,
        out_shape=jax.ShapeDtypeStruct((N, HD), jnp.float32),
        grid=(grid_n,),
        in_specs=[
            pl.BlockSpec((N, HD), lambda i: (0, 0)),
            pl.BlockSpec((heads, N), lambda i: (0, 0)),
            pl.BlockSpec((tile_n, heads), lambda i: (i, 0)),
            pl.BlockSpec((tile_n, N), lambda i: (i, 0)),
        ],
        out_specs=pl.BlockSpec((tile_n, HD), lambda i: (i, 0)),
        compiler_params=pltpu.CompilerParams(
            dimension_semantics=("parallel",),
            vmem_limit_bytes=64 * 1024 * 1024,
        ),
        cost_estimate=pl.CostEstimate(
            flops=2 * heads * N * N * dout + 8 * heads * N * N,
            transcendentals=heads * N * N,
            bytes_accessed=grid_n * N * HD * 2 + heads * N * 4
            + N * heads * 4 + N * N * 1 + N * HD * 4,
        ),
    )(z, elT, er, adj_i8)
    return out


# ----------------------------------------------------------------------------
# Parameters (synthetic, matching GAT.__init__ layer shapes).
# ----------------------------------------------------------------------------
def init_gat_params(key, input_dim, num_hidden, num_classes, num_layers, heads):
    dims = [(input_dim, num_hidden)]
    dims += [(num_hidden * heads, num_hidden)] * (num_layers - 1)
    dims += [(num_hidden * heads, num_classes)]
    params = []
    for din, dout in dims:
        key, k1, k2, k3 = jax.random.split(key, 4)
        scale = jnp.sqrt(2.0 / (din + dout)).astype(jnp.float32)
        w = jax.random.normal(k1, (heads, din, dout), jnp.float32) * scale
        al = jax.random.normal(k2, (heads, dout), jnp.float32) * 0.1
        ar = jax.random.normal(k3, (heads, dout), jnp.float32) * 0.1
        params.append((w, al, ar))
    return params


def pack_layer_params(w, al, ar):
    """(H, Din, Dout) per-head params -> lane-dense packed kernel operands."""
    heads, din, dout = w.shape
    # W_packed[:, h*Dout:(h+1)*Dout] = w[h]  -> one wide matmul for all heads.
    w_packed = jnp.transpose(w, (1, 0, 2)).reshape(din, heads * dout)
    w_packed = w_packed.astype(jnp.bfloat16)
    # Block-diagonal attention packings: (z @ Al)[:, h] = sum_d z_h[:, d]*al[h, d].
    eye = jnp.eye(heads, dtype=jnp.float32)
    al_mat = (al[:, :, None] * eye[:, None, :]).reshape(heads * dout, heads)
    ar_mat = (ar[:, :, None] * eye[:, None, :]).reshape(heads * dout, heads)
    return w_packed, al_mat, ar_mat


# ----------------------------------------------------------------------------
# Full GAT forward (hidden layers -> flatten(1), final layer -> mean over heads).
# ----------------------------------------------------------------------------
def gat_forward(adj_i8, x, params):
    h = x
    for (w, al, ar) in params[:-1]:
        heads, _, dout = w.shape
        wp, alm, arm = pack_layer_params(w, al, ar)
        # (N, H*Dout) is already the .flatten(1) layout -> no transpose between layers.
        h = gat_conv(h, wp, alm, arm, adj_i8, heads=heads, dout=dout,
                     apply_relu=True)
    w, al, ar = params[-1]
    heads, _, nclass = w.shape
    wp, alm, arm = pack_layer_params(w, al, ar)
    out = gat_conv(h, wp, alm, arm, adj_i8, heads=heads, dout=nclass,
                   apply_relu=False)
    N = out.shape[0]
    logits = out.reshape(N, heads, nclass).mean(axis=1)   # .mean(1) over heads
    return logits


if __name__ == "__main__":
    # Small deterministic problem.
    N = 16            # number of graph nodes
    input_dim = 8
    num_hidden = 8
    num_classes = 4
    num_layers = 2    # -> 3 GATConv layers total (2 hidden + 1 output)
    heads = 3

    key = jax.random.PRNGKey(0)
    k_x, k_adj, k_params = jax.random.split(key, 3)

    x = jax.random.normal(k_x, (N, input_dim), jnp.float32)

    # Random directed graph with self-loops; adj[dst, src] = 1 if edge src->dst.
    adj = (jax.random.uniform(k_adj, (N, N)) < 0.3).astype(jnp.float32)
    adj = jnp.maximum(adj, jnp.eye(N, dtype=jnp.float32))  # self-loops -> no 0 in-degree
    adj_i8 = adj.astype(jnp.int8)

    params = init_gat_params(k_params, input_dim, num_hidden, num_classes,
                             num_layers, heads)

    # TODO(synk): feat_drop / attn_drop are 0.0 in the spec defaults, so dropout
    # is intentionally not implemented.
    fwd = jax.jit(lambda a, xx: gat_forward(a, xx, params))
    logits = fwd(adj_i8, x)
    logits = jax.block_until_ready(logits)
    assert logits.shape == (N, num_classes)
    assert bool(jnp.all(jnp.isfinite(logits)))
    print("KERNEL_OK")
</pallas_src>

<mosaic_0001>
module attributes {stable_mosaic.version = 11 : i64} {
  func.func @_project_kernel(%arg0: i32, %arg1: memref<16x24xf32, #tpu.memory_space<vmem>>, %arg2: memref<24x24xbf16, #tpu.memory_space<vmem>>, %arg3: memref<24x3xf32, #tpu.memory_space<vmem>>, %arg4: memref<24x3xf32, #tpu.memory_space<vmem>>, %arg5: memref<16x24xbf16, #tpu.memory_space<vmem>>, %arg6: memref<16x3xf32, #tpu.memory_space<vmem>>, %arg7: memref<16x3xf32, #tpu.memory_space<vmem>>) attributes {dimension_semantics = [#tpu.dimension_semantics<parallel>], iteration_bounds = array<i64: 1>, scalar_prefetch = 0 : i64, scratch_operands = 0 : i64, tpu.core_type = #tpu.core_type<tc>, window_params = [{transform_indices = @transform_0, window_bounds = array<i64: 16, 24>}, {pipeline_mode = #tpu.pipeline_mode<synchronous>, transform_indices = @transform_1, window_bounds = array<i64: 24, 24>}, {pipeline_mode = #tpu.pipeline_mode<synchronous>, transform_indices = @transform_2, window_bounds = array<i64: 24, 3>}, {pipeline_mode = #tpu.pipeline_mode<synchronous>, transform_indices = @transform_3, window_bounds = array<i64: 24, 3>}, {transform_indices = @transform_4, window_bounds = array<i64: 16, 24>}, {transform_indices = @transform_5, window_bounds = array<i64: 16, 3>}, {transform_indices = @transform_6, window_bounds = array<i64: 16, 3>}]} {
    %c0 = arith.constant 0 : index
    %c0_0 = arith.constant 0 : index
    %0 = vector.load %arg1[%c0, %c0_0] : memref<16x24xf32, #tpu.memory_space<vmem>>, vector<16x24xf32>
    %1 = arith.truncf %0 : vector<16x24xf32> to vector<16x24xbf16>
    %c0_1 = arith.constant 0 : index
    %c0_2 = arith.constant 0 : index
    %2 = vector.load %arg2[%c0_1, %c0_2] : memref<24x24xbf16, #tpu.memory_space<vmem>>, vector<24x24xbf16>
    %cst = arith.constant dense<0.000000e+00> : vector<16x24xf32>
    %3 = tpu.matmul %1, %2, %cst {dimension_numbers = #tpu.dot_dimension_numbers<[1], [0], [0], [1], [0, 0, 1, 1], [], []>} : vector<16x24xbf16>, vector<24x24xbf16>, vector<16x24xf32> -> vector<16x24xf32>
    %c0_3 = arith.constant 0 : index
    %c0_4 = arith.constant 0 : index
    %4 = vector.load %arg3[%c0_3, %c0_4] : memref<24x3xf32, #tpu.memory_space<vmem>>, vector<24x3xf32>
    %cst_5 = arith.constant dense<0.000000e+00> : vector<16x3xf32>
    %5 = tpu.matmul %3, %4, %cst_5 {dimension_numbers = #tpu.dot_dimension_numbers<[1], [0], [0], [1], [0, 0, 1, 1], [], []>} : vector<16x24xf32>, vector<24x3xf32>, vector<16x3xf32> -> vector<16x3xf32>
    %c0_6 = arith.constant 0 : index
    %c0_7 = arith.constant 0 : index
    %6 = vector.load %arg6[%c0_6, %c0_7] : memref<16x3xf32, #tpu.memory_space<vmem>>, vector<16x3xf32>
    tpu.vector_store %arg6[%c0_6, %c0_7], %5 {strides = array<i32>} : memref<16x3xf32, #tpu.memory_space<vmem>>, vector<16x3xf32>,
    %c0_8 = arith.constant 0 : index
    %c0_9 = arith.constant 0 : index
    %7 = vector.load %arg4[%c0_8, %c0_9] : memref<24x3xf32, #tpu.memory_space<vmem>>, vector<24x3xf32>
    %cst_10 = arith.constant dense<0.000000e+00> : vector<16x3xf32>
    %8 = tpu.matmul %3, %7, %cst_10 {dimension_numbers = #tpu.dot_dimension_numbers<[1], [0], [0], [1], [0, 0, 1, 1], [], []>} : vector<16x24xf32>, vector<24x3xf32>, vector<16x3xf32> -> vector<16x3xf32>
    %c0_11 = arith.constant 0 : index
    %c0_12 = arith.constant 0 : index
    %9 = vector.load %arg7[%c0_11, %c0_12] : memref<16x3xf32, #tpu.memory_space<vmem>>, vector<16x3xf32>
    tpu.vector_store %arg7[%c0_11, %c0_12], %8 {strides = array<i32>} : memref<16x3xf32, #tpu.memory_space<vmem>>, vector<16x3xf32>,
    %10 = arith.truncf %3 : vector<16x24xf32> to vector<16x24xbf16>
    %c0_13 = arith.constant 0 : index
    %c0_14 = arith.constant 0 : index
    %11 = vector.load %arg5[%c0_13, %c0_14] : memref<16x24xbf16, #tpu.memory_space<vmem>>, vector<16x24xbf16>
    tpu.vector_store %arg5[%c0_13, %c0_14], %10 {strides = array<i32>} : memref<16x24xbf16, #tpu.memory_space<vmem>>, vector<16x24xbf16>,
    return
  }
  func.func @transform_0(%arg0: i32) -> (i32, i32) {
    %c0_i32 = arith.constant 0 : i32
    %c0_i32_0 = arith.constant 0 : i32
    return %arg0, %c0_i32 : i32, i32
  }
  func.func @transform_1(%arg0: i32) -> (i32, i32) {
    %c0_i32 = arith.constant 0 : i32
    %c0_i32_0 = arith.constant 0 : i32
    %c0_i32_1 = arith.constant 0 : i32
    return %c0_i32, %c0_i32_0 : i32, i32
  }
  func.func @transform_2(%arg0: i32) -> (i32, i32) {
    %c0_i32 = arith.constant 0 : i32
    %c0_i32_0 = arith.constant 0 : i32
    %c0_i32_1 = arith.constant 0 : i32
    return %c0_i32, %c0_i32_0 : i32, i32
  }
  func.func @transform_3(%arg0: i32) -> (i32, i32) {
    %c0_i32 = arith.constant 0 : i32
    %c0_i32_0 = arith.constant 0 : i32
    %c0_i32_1 = arith.constant 0 : i32
    return %c0_i32, %c0_i32_0 : i32, i32
  }
  func.func @transform_4(%arg0: i32) -> (i32, i32) {
    %c0_i32 = arith.constant 0 : i32
    %c0_i32_0 = arith.constant 0 : i32
    return %arg0, %c0_i32 : i32, i32
  }
  func.func @transform_5(%arg0: i32) -> (i32, i32) {
    %c0_i32 = arith.constant 0 : i32
    %c0_i32_0 = arith.constant 0 : i32
    return %arg0, %c0_i32 : i32, i32
  }
  func.func @transform_6(%arg0: i32) -> (i32, i32) {
    %c0_i32 = arith.constant 0 : i32
    %c0_i32_0 = arith.constant 0 : i32
    return %arg0, %c0_i32 : i32, i32
  }
}

module attributes {stable_mosaic.version = 11 : i64} {
  func.func @_project_kernel(%arg0: i32, %arg1: memref<16x8xf32, #tpu.memory_space<vmem>>, %arg2: memref<8x24xbf16, #tpu.memory_space<vmem>>, %arg3: memref<24x3xf32, #tpu.memory_space<vmem>>, %arg4: memref<24x3xf32, #tpu.memory_space<vmem>>, %arg5: memref<16x24xbf16, #tpu.memory_space<vmem>>, %arg6: memref<16x3xf32, #tpu.memory_space<vmem>>, %arg7: memref<16x3xf32, #tpu.memory_space<vmem>>) attributes {dimension_semantics = [#tpu.dimension_semantics<parallel>], iteration_bounds = array<i64: 1>, scalar_prefetch = 0 : i64, scratch_operands = 0 : i64, tpu.core_type = #tpu.core_type<tc>, window_params = [{transform_indices = @transform_0, window_bounds = array<i64: 16, 8>}, {pipeline_mode = #tpu.pipeline_mode<synchronous>, transform_indices = @transform_1, window_bounds = array<i64: 8, 24>}, {pipeline_mode = #tpu.pipeline_mode<synchronous>, transform_indices = @transform_2, window_bounds = array<i64: 24, 3>}, {pipeline_mode = #tpu.pipeline_mode<synchronous>, transform_indices = @transform_3, window_bounds = array<i64: 24, 3>}, {transform_indices = @transform_4, window_bounds = array<i64: 16, 24>}, {transform_indices = @transform_5, window_bounds = array<i64: 16, 3>}, {transform_indices = @transform_6, window_bounds = array<i64: 16, 3>}]} {
    %c0 = arith.constant 0 : index
    %c0_0 = arith.constant 0 : index
    %0 = vector.load %arg1[%c0, %c0_0] : memref<16x8xf32, #tpu.memory_space<vmem>>, vector<16x8xf32>
    %1 = arith.truncf %0 : vector<16x8xf32> to vector<16x8xbf16>
    %c0_1 = arith.constant 0 : index
    %c0_2 = arith.constant 0 : index
    %2 = vector.load %arg2[%c0_1, %c0_2] : memref<8x24xbf16, #tpu.memory_space<vmem>>, vector<8x24xbf16>
    %cst = arith.constant dense<0.000000e+00> : vector<16x24xf32>
    %3 = tpu.matmul %1, %2, %cst {dimension_numbers = #tpu.dot_dimension_numbers<[1], [0], [0], [1], [0, 0, 1, 1], [], []>} : vector<16x8xbf16>, vector<8x24xbf16>, vector<16x24xf32> -> vector<16x24xf32>
    %c0_3 = arith.constant 0 : index
    %c0_4 = arith.constant 0 : index
    %4 = vector.load %arg3[%c0_3, %c0_4] : memref<24x3xf32, #tpu.memory_space<vmem>>, vector<24x3xf32>
    %cst_5 = arith.constant dense<0.000000e+00> : vector<16x3xf32>
    %5 = tpu.matmul %3, %4, %cst_5 {dimension_numbers = #tpu.dot_dimension_numbers<[1], [0], [0], [1], [0, 0, 1, 1], [], []>} : vector<16x24xf32>, vector<24x3xf32>, vector<16x3xf32> -> vector<16x3xf32>
    %c0_6 = arith.constant 0 : index
    %c0_7 = arith.constant 0 : index
    %6 = vector.load %arg6[%c0_6, %c0_7] : memref<16x3xf32, #tpu.memory_space<vmem>>, vector<16x3xf32>
    tpu.vector_store %arg6[%c0_6, %c0_7], %5 {strides = array<i32>} : memref<16x3xf32, #tpu.memory_space<vmem>>, vector<16x3xf32>,
    %c0_8 = arith.constant 0 : index
    %c0_9 = arith.constant 0 : index
    %7 = vector.load %arg4[%c0_8, %c0_9] : memref<24x3xf32, #tpu.memory_space<vmem>>, vector<24x3xf32>
    %cst_10 = arith.constant dense<0.000000e+00> : vector<16x3xf32>
    %8 = tpu.matmul %3, %7, %cst_10 {dimension_numbers = #tpu.dot_dimension_numbers<[1], [0], [0], [1], [0, 0, 1, 1], [], []>} : vector<16x24xf32>, vector<24x3xf32>, vector<16x3xf32> -> vector<16x3xf32>
    %c0_11 = arith.constant 0 : index
    %c0_12 = arith.constant 0 : index
    %9 = vector.load %arg7[%c0_11, %c0_12] : memref<16x3xf32, #tpu.memory_space<vmem>>, vector<16x3xf32>
    tpu.vector_store %arg7[%c0_11, %c0_12], %8 {strides = array<i32>} : memref<16x3xf32, #tpu.memory_space<vmem>>, vector<16x3xf32>,
    %10 = arith.truncf %3 : vector<16x24xf32> to vector<16x24xbf16>
    %c0_13 = arith.constant 0 : index
    %c0_14 = arith.constant 0 : index
    %11 = vector.load %arg5[%c0_13, %c0_14] : memref<16x24xbf16, #tpu.memory_space<vmem>>, vector<16x24xbf16>
    tpu.vector_store %arg5[%c0_13, %c0_14], %10 {strides = array<i32>} : memref<16x24xbf16, #tpu.memory_space<vmem>>, vector<16x24xbf16>,
    return
  }
  func.func @transform_0(%arg0: i32) -> (i32, i32) {
    %c0_i32 = arith.constant 0 : i32
    %c0_i32_0 = arith.constant 0 : i32
    return %arg0, %c0_i32 : i32, i32
  }
  func.func @transform_1(%arg0: i32) -> (i32, i32) {
    %c0_i32 = arith.constant 0 : i32
    %c0_i32_0 = arith.constant 0 : i32
    %c0_i32_1 = arith.constant 0 : i32
    return %c0_i32, %c0_i32_0 : i32, i32
  }
  func.func @transform_2(%arg0: i32) -> (i32, i32) {
    %c0_i32 = arith.constant 0 : i32
    %c0_i32_0 = arith.constant 0 : i32
    %c0_i32_1 = arith.constant 0 : i32
    return %c0_i32, %c0_i32_0 : i32, i32
  }
  func.func @transform_3(%arg0: i32) -> (i32, i32) {
    %c0_i32 = arith.constant 0 : i32
    %c0_i32_0 = arith.constant 0 : i32
    %c0_i32_1 = arith.constant 0 : i32
    return %c0_i32, %c0_i32_0 : i32, i32
  }
  func.func @transform_4(%arg0: i32) -> (i32, i32) {
    %c0_i32 = arith.constant 0 : i32
    %c0_i32_0 = arith.constant 0 : i32
    return %arg0, %c0_i32 : i32, i32
  }
  func.func @transform_5(%arg0: i32) -> (i32, i32) {
    %c0_i32 = arith.constant 0 : i32
    %c0_i32_0 = arith.constant 0 : i32
    return %arg0, %c0_i32 : i32, i32
  }
  func.func @transform_6(%arg0: i32) -> (i32, i32) {
    %c0_i32 = arith.constant 0 : i32
    %c0_i32_0 = arith.constant 0 : i32
    return %arg0, %c0_i32 : i32, i32
  }
}

module attributes {stable_mosaic.version = 11 : i64} {
  func.func @_attn_kernel(%arg0: i32, %arg1: memref<16x24xbf16, #tpu.memory_space<vmem>>, %arg2: memref<3x16xf32, #tpu.memory_space<vmem>>, %arg3: memref<16x3xf32, #tpu.memory_space<vmem>>, %arg4: memref<16x16xi8, #tpu.memory_space<vmem>>, %arg5: memref<16x24xf32, #tpu.memory_space<vmem>>) attributes {dimension_semantics = [#tpu.dimension_semantics<parallel>], iteration_bounds = array<i64: 1>, scalar_prefetch = 0 : i64, scratch_operands = 0 : i64, tpu.core_type = #tpu.core_type<tc>, window_params = [{pipeline_mode = #tpu.pipeline_mode<synchronous>, transform_indices = @transform_0, window_bounds = array<i64: 16, 24>}, {pipeline_mode = #tpu.pipeline_mode<synchronous>, transform_indices = @transform_1, window_bounds = array<i64: 3, 16>}, {transform_indices = @transform_2, window_bounds = array<i64: 16, 3>}, {transform_indices = @transform_3, window_bounds = array<i64: 16, 16>}, {transform_indices = @transform_4, window_bounds = array<i64: 16, 24>}]} {
    %c0 = arith.constant 0 : index
    %c0_0 = arith.constant 0 : index
    %0 = vector.load %arg4[%c0, %c0_0] : memref<16x16xi8, #tpu.memory_space<vmem>>, vector<16x16xi8>
    %1 = arith.sitofp %0 : vector<16x16xi8> to vector<16x16xf32>
    %cst = arith.constant 1.000000e+00 : f32
    %2 = vector.broadcast %cst : f32 to vector<16x16xf32>
    %3 = arith.subf %1, %2 : vector<16x16xf32>
    %cst_1 = arith.constant 1.000000e+30 : f32
    %4 = vector.broadcast %cst_1 : f32 to vector<16x16xf32>
    %5 = arith.mulf %3, %4 : vector<16x16xf32>
    %c0_2 = arith.constant 0 : index
    %c0_3 = arith.constant 0 : index
    %6 = vector.load %arg1[%c0_2, %c0_3] : memref<16x24xbf16, #tpu.memory_space<vmem>>, vector<16x24xbf16>
    %c0_4 = arith.constant 0 : index
    %c0_5 = arith.constant 0 : index
    %7 = vector.load %arg2[%c0_4, %c0_5] : memref<3x16xf32, #tpu.memory_space<vmem>>, vector<3x16xf32>
    %c0_6 = arith.constant 0 : index
    %c0_7 = arith.constant 0 : index
    %8 = vector.load %arg3[%c0_6, %c0_7] : memref<16x3xf32, #tpu.memory_space<vmem>>, vector<16x3xf32>
    %9 = vector.extract_strided_slice %7 {offsets = [0, 0], sizes = [1, 16], strides = [1, 1]} : vector<3x16xf32> to vector<1x16xf32>
    %10 = vector.extract_strided_slice %8 {offsets = [0, 0], sizes = [16, 1], strides = [1, 1]} : vector<16x3xf32> to vector<16x1xf32>
    %11 = vector.broadcast %9 : vector<1x16xf32> to vector<16x16xf32>
    %12 = vector.broadcast %10 : vector<16x1xf32> to vector<16x16xf32>
    %13 = arith.addf %11, %12 : vector<16x16xf32>
    %cst_8 = arith.constant 0.000000e+00 : f32
    %14 = vector.broadcast %cst_8 : f32 to vector<16x16xf32>
    %15 = arith.cmpf ogt, %13, %14 : vector<16x16xf32>
    %cst_9 = arith.constant 2.000000e-01 : f32
    %16 = vector.broadcast %cst_9 : f32 to vector<16x16xf32>
    %17 = arith.mulf %16, %13 : vector<16x16xf32>
    %18 = arith.select %15, %13, %17 : vector<16x16xi1>, vector<16x16xf32>
    %19 = arith.mulf %18, %1 : vector<16x16xf32>
    %20 = arith.addf %19, %5 : vector<16x16xf32>
    %cst_10 = arith.constant dense<0xFF800000> : vector<16xf32>
    %21 = vector.multi_reduction <maximumf>, %20, %cst_10 [1] : vector<16x16xf32> to vector<16xf32>
    %22 = vector.shape_cast %21 : vector<16xf32> to vector<16x1xf32>
    %23 = vector.broadcast %22 : vector<16x1xf32> to vector<16x16xf32>
    %24 = arith.subf %20, %23 : vector<16x16xf32>
    %25 = math.exp %24 : vector<16x16xf32>
    %26 = arith.mulf %25, %1 : vector<16x16xf32>
    %cst_11 = arith.constant dense<0.000000e+00> : vector<16xf32>
    %27 = vector.multi_reduction <add>, %26, %cst_11 [1] : vector<16x16xf32> to vector<16xf32>
    %28 = vector.shape_cast %27 : vector<16xf32> to vector<16x1xf32>
    %cst_12 = arith.constant 9.99999968E-21 : f32
    %29 = vector.broadcast %cst_12 : f32 to vector<16x1xf32>
    %30 = arith.maximumf %28, %29 : vector<16x1xf32>
    %31 = tpu.reciprocal %30 {approx = true} : vector<16x1xf32> -> vector<16x1xf32>
    %32 = vector.extract_strided_slice %6 {offsets = [0, 0], sizes = [16, 8], strides = [1, 1]} : vector<16x24xbf16> to vector<16x8xbf16>
    %33 = arith.truncf %26 : vector<16x16xf32> to vector<16x16xbf16>
    %cst_13 = arith.constant dense<0.000000e+00> : vector<16x8xf32>
    %34 = tpu.matmul %33, %32, %cst_13 {dimension_numbers = #tpu.dot_dimension_numbers<[1], [0], [0], [1], [0, 0, 1, 1], [], []>} : vector<16x16xbf16>, vector<16x8xbf16>, vector<16x8xf32> -> vector<16x8xf32>
    %35 = vector.broadcast %31 : vector<16x1xf32> to vector<16x8xf32>
    %36 = arith.mulf %34, %35 : vector<16x8xf32>
    %cst_14 = arith.constant 0.000000e+00 : f32
    %37 = vector.broadcast %cst_14 : f32 to vector<16x8xf32>
    %38 = arith.maximumf %36, %37 : vector<16x8xf32>
    %39 = vector.extract_strided_slice %7 {offsets = [1, 0], sizes = [1, 16], strides = [1, 1]} : vector<3x16xf32> to vector<1x16xf32>
    %40 = vector.extract_strided_slice %8 {offsets = [0, 1], sizes = [16, 1], strides = [1, 1]} : vector<16x3xf32> to vector<16x1xf32>
    %41 = vector.broadcast %39 : vector<1x16xf32> to vector<16x16xf32>
    %42 = vector.broadcast %40 : vector<16x1xf32> to vector<16x16xf32>
    %43 = arith.addf %41, %42 : vector<16x16xf32>
    %cst_15 = arith.constant 0.000000e+00 : f32
    %44 = vector.broadcast %cst_15 : f32 to vector<16x16xf32>
    %45 = arith.cmpf ogt, %43, %44 : vector<16x16xf32>
    %cst_16 = arith.constant 2.000000e-01 : f32
    %46 = vector.broadcast %cst_16 : f32 to vector<16x16xf32>
    %47 = arith.mulf %46, %43 : vector<16x16xf32>
    %48 = arith.select %45, %43, %47 : vector<16x16xi1>, vector<16x16xf32>
    %49 = arith.mulf %48, %1 : vector<16x16xf32>
    %50 = arith.addf %49, %5 : vector<16x16xf32>
    %cst_17 = arith.constant dense<0xFF800000> : vector<16xf32>
    %51 = vector.multi_reduction <maximumf>, %50, %cst_17 [1] : vector<16x16xf32> to vector<16xf32>
    %52 = vector.shape_cast %51 : vector<16xf32> to vector<16x1xf32>
    %53 = vector.broadcast %52 : vector<16x1xf32> to vector<16x16xf32>
    %54 = arith.subf %50, %53 : vector<16x16xf32>
    %55 = math.exp %54 : vector<16x16xf32>
    %56 = arith.mulf %55, %1 : vector<16x16xf32>
    %cst_18 = arith.constant dense<0.000000e+00> : vector<16xf32>
    %57 = vector.multi_reduction <add>, %56, %cst_18 [1] : vector<16x16xf32> to vector<16xf32>
    %58 = vector.shape_cast %57 : vector<16xf32> to vector<16x1xf32>
    %cst_19 = arith.constant 9.99999968E-21 : f32
    %59 = vector.broadcast %cst_19 : f32 to vector<16x1xf32>
    %60 = arith.maximumf %58, %59 : vector<16x1xf32>
    %61 = tpu.reciprocal %60 {approx = true} : vector<16x1xf32> -> vector<16x1xf32>
    %62 = vector.extract_strided_slice %6 {offsets = [0, 8], sizes = [16, 8], strides = [1, 1]} : vector<16x24xbf16> to vector<16x8xbf16>
    %63 = arith.truncf %56 : vector<16x16xf32> to vector<16x16xbf16>
    %cst_20 = arith.constant dense<0.000000e+00> : vector<16x8xf32>
    %64 = tpu.matmul %63, %62, %cst_20 {dimension_numbers = #tpu.dot_dimension_numbers<[1], [0], [0], [1], [0, 0, 1, 1], [], []>} : vector<16x16xbf16>, vector<16x8xbf16>, vector<16x8xf32> -> vector<16x8xf32>
    %65 = vector.broadcast %61 : vector<16x1xf32> to vector<16x8xf32>
    %66 = arith.mulf %64, %65 : vector<16x8xf32>
    %cst_21 = arith.constant 0.000000e+00 : f32
    %67 = vector.broadcast %cst_21 : f32 to vector<16x8xf32>
    %68 = arith.maximumf %66, %67 : vector<16x8xf32>
    %69 = vector.extract_strided_slice %7 {offsets = [2, 0], sizes = [1, 16], strides = [1, 1]} : vector<3x16xf32> to vector<1x16xf32>
    %70 = vector.extract_strided_slice %8 {offsets = [0, 2], sizes = [16, 1], strides = [1, 1]} : vector<16x3xf32> to vector<16x1xf32>
    %71 = vector.broadcast %69 : vector<1x16xf32> to vector<16x16xf32>
    %72 = vector.broadcast %70 : vector<16x1xf32> to vector<16x16xf32>
    %73 = arith.addf %71, %72 : vector<16x16xf32>
    %cst_22 = arith.constant 0.000000e+00 : f32
    %74 = vector.broadcast %cst_22 : f32 to vector<16x16xf32>
    %75 = arith.cmpf ogt, %73, %74 : vector<16x16xf32>
    %cst_23 = arith.constant 2.000000e-01 : f32
    %76 = vector.broadcast %cst_23 : f32 to vector<16x16xf32>
    %77 = arith.mulf %76, %73 : vector<16x16xf32>
    %78 = arith.select %75, %73, %77 : vector<16x16xi1>, vector<16x16xf32>
    %79 = arith.mulf %78, %1 : vector<16x16xf32>
    %80 = arith.addf %79, %5 : vector<16x16xf32>
    %cst_24 = arith.constant dense<0xFF800000> : vector<16xf32>
    %81 = vector.multi_reduction <maximumf>, %80, %cst_24 [1] : vector<16x16xf32> to vector<16xf32>
    %82 = vector.shape_cast %81 : vector<16xf32> to vector<16x1xf32>
    %83 = vector.broadcast %82 : vector<16x1xf32> to vector<16x16xf32>
    %84 = arith.subf %80, %83 : vector<16x16xf32>
    %85 = math.exp %84 : vector<16x16xf32>
    %86 = arith.mulf %85, %1 : vector<16x16xf32>
    %cst_25 = arith.constant dense<0.000000e+00> : vector<16xf32>
    %87 = vector.multi_reduction <add>, %86, %cst_25 [1] : vector<16x16xf32> to vector<16xf32>
    %88 = vector.shape_cast %87 : vector<16xf32> to vector<16x1xf32>
    %cst_26 = arith.constant 9.99999968E-21 : f32
    %89 = vector.broadcast %cst_26 : f32 to vector<16x1xf32>
    %90 = arith.maximumf %88, %89 : vector<16x1xf32>
    %91 = tpu.reciprocal %90 {approx = true} : vector<16x1xf32> -> vector<16x1xf32>
    %92 = vector.extract_strided_slice %6 {offsets = [0, 16], sizes = [16, 8], strides = [1, 1]} : vector<16x24xbf16> to vector<16x8xbf16>
    %93 = arith.truncf %86 : vector<16x16xf32> to vector<16x16xbf16>
    %cst_27 = arith.constant dense<0.000000e+00> : vector<16x8xf32>
    %94 = tpu.matmul %93, %92, %cst_27 {dimension_numbers = #tpu.dot_dimension_numbers<[1], [0], [0], [1], [0, 0, 1, 1], [], []>} : vector<16x16xbf16>, vector<16x8xbf16>, vector<16x8xf32> -> vector<16x8xf32>
    %95 = vector.broadcast %91 : vector<16x1xf32> to vector<16x8xf32>
    %96 = arith.mulf %94, %95 : vector<16x8xf32>
    %cst_28 = arith.constant 0.000000e+00 : f32
    %97 = vector.broadcast %cst_28 : f32 to vector<16x8xf32>
    %98 = arith.maximumf %96, %97 : vector<16x8xf32>
    %99 = tpu.concatenate %38, %68, %98 in 1 : vector<16x8xf32>, vector<16x8xf32>, vector<16x8xf32> -> vector<16x24xf32>
    %c0_29 = arith.constant 0 : index
    %c0_30 = arith.constant 0 : index
    %100 = vector.load %arg5[%c0_29, %c0_30] : memref<16x24xf32, #tpu.memory_space<vmem>>, vector<16x24xf32>
    tpu.vector_store %arg5[%c0_29, %c0_30], %99 {strides = array<i32>} : memref<16x24xf32, #tpu.memory_space<vmem>>, vector<16x24xf32>,
    return
  }
  func.func @transform_0(%arg0: i32) -> (i32, i32) {
    %c0_i32 = arith.constant 0 : i32
    %c0_i32_0 = arith.constant 0 : i32
    %c0_i32_1 = arith.constant 0 : i32
    return %c0_i32, %c0_i32_0 : i32, i32
  }
  func.func @transform_1(%arg0: i32) -> (i32, i32) {
    %c0_i32 = arith.constant 0 : i32
    %c0_i32_0 = arith.constant 0 : i32
    %c0_i32_1 = arith.constant 0 : i32
    return %c0_i32, %c0_i32_0 : i32, i32
  }
  func.func @transform_2(%arg0: i32) -> (i32, i32) {
    %c0_i32 = arith.constant 0 : i32
    %c0_i32_0 = arith.constant 0 : i32
    return %arg0, %c0_i32 : i32, i32
  }
  func.func @transform_3(%arg0: i32) -> (i32, i32) {
    %c0_i32 = arith.constant 0 : i32
    %c0_i32_0 = arith.constant 0 : i32
    return %arg0, %c0_i32 : i32, i32
  }
  func.func @transform_4(%arg0: i32) -> (i32, i32) {
    %c0_i32 = arith.constant 0 : i32
    %c0_i32_0 = arith.constant 0 : i32
    return %arg0, %c0_i32 : i32, i32
  }
}

module attributes {stable_mosaic.version = 11 : i64} {
  func.func @_project_kernel(%arg0: i32, %arg1: memref<16x24xf32, #tpu.memory_space<vmem>>, %arg2: memref<24x12xbf16, #tpu.memory_space<vmem>>, %arg3: memref<12x3xf32, #tpu.memory_space<vmem>>, %arg4: memref<12x3xf32, #tpu.memory_space<vmem>>, %arg5: memref<16x12xbf16, #tpu.memory_space<vmem>>, %arg6: memref<16x3xf32, #tpu.memory_space<vmem>>, %arg7: memref<16x3xf32, #tpu.memory_space<vmem>>) attributes {dimension_semantics = [#tpu.dimension_semantics<parallel>], iteration_bounds = array<i64: 1>, scalar_prefetch = 0 : i64, scratch_operands = 0 : i64, tpu.core_type = #tpu.core_type<tc>, window_params = [{transform_indices = @transform_0, window_bounds = array<i64: 16, 24>}, {pipeline_mode = #tpu.pipeline_mode<synchronous>, transform_indices = @transform_1, window_bounds = array<i64: 24, 12>}, {pipeline_mode = #tpu.pipeline_mode<synchronous>, transform_indices = @transform_2, window_bounds = array<i64: 12, 3>}, {pipeline_mode = #tpu.pipeline_mode<synchronous>, transform_indices = @transform_3, window_bounds = array<i64: 12, 3>}, {transform_indices = @transform_4, window_bounds = array<i64: 16, 12>}, {transform_indices = @transform_5, window_bounds = array<i64: 16, 3>}, {transform_indices = @transform_6, window_bounds = array<i64: 16, 3>}]} {
    %c0 = arith.constant 0 : index
    %c0_0 = arith.constant 0 : index
    %0 = vector.load %arg1[%c0, %c0_0] : memref<16x24xf32, #tpu.memory_space<vmem>>, vector<16x24xf32>
    %1 = arith.truncf %0 : vector<16x24xf32> to vector<16x24xbf16>
    %c0_1 = arith.constant 0 : index
    %c0_2 = arith.constant 0 : index
    %2 = vector.load %arg2[%c0_1, %c0_2] : memref<24x12xbf16, #tpu.memory_space<vmem>>, vector<24x12xbf16>
    %cst = arith.constant dense<0.000000e+00> : vector<16x12xf32>
    %3 = tpu.matmul %1, %2, %cst {dimension_numbers = #tpu.dot_dimension_numbers<[1], [0], [0], [1], [0, 0, 1, 1], [], []>} : vector<16x24xbf16>, vector<24x12xbf16>, vector<16x12xf32> -> vector<16x12xf32>
    %c0_3 = arith.constant 0 : index
    %c0_4 = arith.constant 0 : index
    %4 = vector.load %arg3[%c0_3, %c0_4] : memref<12x3xf32, #tpu.memory_space<vmem>>, vector<12x3xf32>
    %cst_5 = arith.constant dense<0.000000e+00> : vector<16x3xf32>
    %5 = tpu.matmul %3, %4, %cst_5 {dimension_numbers = #tpu.dot_dimension_numbers<[1], [0], [0], [1], [0, 0, 1, 1], [], []>} : vector<16x12xf32>, vector<12x3xf32>, vector<16x3xf32> -> vector<16x3xf32>
    %c0_6 = arith.constant 0 : index
    %c0_7 = arith.constant 0 : index
    %6 = vector.load %arg6[%c0_6, %c0_7] : memref<16x3xf32, #tpu.memory_space<vmem>>, vector<16x3xf32>
    tpu.vector_store %arg6[%c0_6, %c0_7], %5 {strides = array<i32>} : memref<16x3xf32, #tpu.memory_space<vmem>>, vector<16x3xf32>,
    %c0_8 = arith.constant 0 : index
    %c0_9 = arith.constant 0 : index
    %7 = vector.load %arg4[%c0_8, %c0_9] : memref<12x3xf32, #tpu.memory_space<vmem>>, vector<12x3xf32>
    %cst_10 = arith.constant dense<0.000000e+00> : vector<16x3xf32>
    %8 = tpu.matmul %3, %7, %cst_10 {dimension_numbers = #tpu.dot_dimension_numbers<[1], [0], [0], [1], [0, 0, 1, 1], [], []>} : vector<16x12xf32>, vector<12x3xf32>, vector<16x3xf32> -> vector<16x3xf32>
    %c0_11 = arith.constant 0 : index
    %c0_12 = arith.constant 0 : index
    %9 = vector.load %arg7[%c0_11, %c0_12] : memref<16x3xf32, #tpu.memory_space<vmem>>, vector<16x3xf32>
    tpu.vector_store %arg7[%c0_11, %c0_12], %8 {strides = array<i32>} : memref<16x3xf32, #tpu.memory_space<vmem>>, vector<16x3xf32>,
    %10 = arith.truncf %3 : vector<16x12xf32> to vector<16x12xbf16>
    %c0_13 = arith.constant 0 : index
    %c0_14 = arith.constant 0 : index
    %11 = vector.load %arg5[%c0_13, %c0_14] : memref<16x12xbf16, #tpu.memory_space<vmem>>, vector<16x12xbf16>
    tpu.vector_store %arg5[%c0_13, %c0_14], %10 {strides = array<i32>} : memref<16x12xbf16, #tpu.memory_space<vmem>>, vector<16x12xbf16>,
    return
  }
  func.func @transform_0(%arg0: i32) -> (i32, i32) {
    %c0_i32 = arith.constant 0 : i32
    %c0_i32_0 = arith.constant 0 : i32
    return %arg0, %c0_i32 : i32, i32
  }
  func.func @transform_1(%arg0: i32) -> (i32, i32) {
    %c0_i32 = arith.constant 0 : i32
    %c0_i32_0 = arith.constant 0 : i32
    %c0_i32_1 = arith.constant 0 : i32
    return %c0_i32, %c0_i32_0 : i32, i32
  }
  func.func @transform_2(%arg0: i32) -> (i32, i32) {
    %c0_i32 = arith.constant 0 : i32
    %c0_i32_0 = arith.constant 0 : i32
    %c0_i32_1 = arith.constant 0 : i32
    return %c0_i32, %c0_i32_0 : i32, i32
  }
  func.func @transform_3(%arg0: i32) -> (i32, i32) {
    %c0_i32 = arith.constant 0 : i32
    %c0_i32_0 = arith.constant 0 : i32
    %c0_i32_1 = arith.constant 0 : i32
    return %c0_i32, %c0_i32_0 : i32, i32
  }
  func.func @transform_4(%arg0: i32) -> (i32, i32) {
    %c0_i32 = arith.constant 0 : i32
    %c0_i32_0 = arith.constant 0 : i32
    return %arg0, %c0_i32 : i32, i32
  }
  func.func @transform_5(%arg0: i32) -> (i32, i32) {
    %c0_i32 = arith.constant 0 : i32
    %c0_i32_0 = arith.constant 0 : i32
    return %arg0, %c0_i32 : i32, i32
  }
  func.func @transform_6(%arg0: i32) -> (i32, i32) {
    %c0_i32 = arith.constant 0 : i32
    %c0_i32_0 = arith.constant 0 : i32
    return %arg0, %c0_i32 : i32, i32
  }
}

module attributes {stable_mosaic.version = 11 : i64} {
  func.func @_attn_kernel(%arg0: i32, %arg1: memref<16x12xbf16, #tpu.memory_space<vmem>>, %arg2: memref<3x16xf32, #tpu.memory_space<vmem>>, %arg3: memref<16x3xf32, #tpu.memory_space<vmem>>, %arg4: memref<16x16xi8, #tpu.memory_space<vmem>>, %arg5: memref<16x12xf32, #tpu.memory_space<vmem>>) attributes {dimension_semantics = [#tpu.dimension_semantics<parallel>], iteration_bounds = array<i64: 1>, scalar_prefetch = 0 : i64, scratch_operands = 0 : i64, tpu.core_type = #tpu.core_type<tc>, window_params = [{pipeline_mode = #tpu.pipeline_mode<synchronous>, transform_indices = @transform_0, window_bounds = array<i64: 16, 12>}, {pipeline_mode = #tpu.pipeline_mode<synchronous>, transform_indices = @transform_1, window_bounds = array<i64: 3, 16>}, {transform_indices = @transform_2, window_bounds = array<i64: 16, 3>}, {transform_indices = @transform_3, window_bounds = array<i64: 16, 16>}, {transform_indices = @transform_4, window_bounds = array<i64: 16, 12>}]} {
    %c0 = arith.constant 0 : index
    %c0_0 = arith.constant 0 : index
    %0 = vector.load %arg4[%c0, %c0_0] : memref<16x16xi8, #tpu.memory_space<vmem>>, vector<16x16xi8>
    %1 = arith.sitofp %0 : vector<16x16xi8> to vector<16x16xf32>
    %cst = arith.constant 1.000000e+00 : f32
    %2 = vector.broadcast %cst : f32 to vector<16x16xf32>
    %3 = arith.subf %1, %2 : vector<16x16xf32>
    %cst_1 = arith.constant 1.000000e+30 : f32
    %4 = vector.broadcast %cst_1 : f32 to vector<16x16xf32>
    %5 = arith.mulf %3, %4 : vector<16x16xf32>
    %c0_2 = arith.constant 0 : index
    %c0_3 = arith.constant 0 : index
    %6 = vector.load %arg1[%c0_2, %c0_3] : memref<16x12xbf16, #tpu.memory_space<vmem>>, vector<16x12xbf16>
    %c0_4 = arith.constant 0 : index
    %c0_5 = arith.constant 0 : index
    %7 = vector.load %arg2[%c0_4, %c0_5] : memref<3x16xf32, #tpu.memory_space<vmem>>, vector<3x16xf32>
    %c0_6 = arith.constant 0 : index
    %c0_7 = arith.constant 0 : index
    %8 = vector.load %arg3[%c0_6, %c0_7] : memref<16x3xf32, #tpu.memory_space<vmem>>, vector<16x3xf32>
    %9 = vector.extract_strided_slice %7 {offsets = [0, 0], sizes = [1, 16], strides = [1, 1]} : vector<3x16xf32> to vector<1x16xf32>
    %10 = vector.extract_strided_slice %8 {offsets = [0, 0], sizes = [16, 1], strides = [1, 1]} : vector<16x3xf32> to vector<16x1xf32>
    %11 = vector.broadcast %9 : vector<1x16xf32> to vector<16x16xf32>
    %12 = vector.broadcast %10 : vector<16x1xf32> to vector<16x16xf32>
    %13 = arith.addf %11, %12 : vector<16x16xf32>
    %cst_8 = arith.constant 0.000000e+00 : f32
    %14 = vector.broadcast %cst_8 : f32 to vector<16x16xf32>
    %15 = arith.cmpf ogt, %13, %14 : vector<16x16xf32>
    %cst_9 = arith.constant 2.000000e-01 : f32
    %16 = vector.broadcast %cst_9 : f32 to vector<16x16xf32>
    %17 = arith.mulf %16, %13 : vector<16x16xf32>
    %18 = arith.select %15, %13, %17 : vector<16x16xi1>, vector<16x16xf32>
    %19 = arith.mulf %18, %1 : vector<16x16xf32>
    %20 = arith.addf %19, %5 : vector<16x16xf32>
    %cst_10 = arith.constant dense<0xFF800000> : vector<16xf32>
    %21 = vector.multi_reduction <maximumf>, %20, %cst_10 [1] : vector<16x16xf32> to vector<16xf32>
    %22 = vector.shape_cast %21 : vector<16xf32> to vector<16x1xf32>
    %23 = vector.broadcast %22 : vector<16x1xf32> to vector<16x16xf32>
    %24 = arith.subf %20, %23 : vector<16x16xf32>
    %25 = math.exp %24 : vector<16x16xf32>
    %26 = arith.mulf %25, %1 : vector<16x16xf32>
    %cst_11 = arith.constant dense<0.000000e+00> : vector<16xf32>
    %27 = vector.multi_reduction <add>, %26, %cst_11 [1] : vector<16x16xf32> to vector<16xf32>
    %28 = vector.shape_cast %27 : vector<16xf32> to vector<16x1xf32>
    %cst_12 = arith.constant 9.99999968E-21 : f32
    %29 = vector.broadcast %cst_12 : f32 to vector<16x1xf32>
    %30 = arith.maximumf %28, %29 : vector<16x1xf32>
    %31 = tpu.reciprocal %30 {approx = true} : vector<16x1xf32> -> vector<16x1xf32>
    %32 = vector.extract_strided_slice %6 {offsets = [0, 0], sizes = [16, 4], strides = [1, 1]} : vector<16x12xbf16> to vector<16x4xbf16>
    %33 = arith.truncf %26 : vector<16x16xf32> to vector<16x16xbf16>
    %cst_13 = arith.constant dense<0.000000e+00> : vector<16x4xf32>
    %34 = tpu.matmul %33, %32, %cst_13 {dimension_numbers = #tpu.dot_dimension_numbers<[1], [0], [0], [1], [0, 0, 1, 1], [], []>} : vector<16x16xbf16>, vector<16x4xbf16>, vector<16x4xf32> -> vector<16x4xf32>
    %35 = vector.broadcast %31 : vector<16x1xf32> to vector<16x4xf32>
    %36 = arith.mulf %34, %35 : vector<16x4xf32>
    %37 = vector.extract_strided_slice %7 {offsets = [1, 0], sizes = [1, 16], strides = [1, 1]} : vector<3x16xf32> to vector<1x16xf32>
    %38 = vector.extract_strided_slice %8 {offsets = [0, 1], sizes = [16, 1], strides = [1, 1]} : vector<16x3xf32> to vector<16x1xf32>
    %39 = vector.broadcast %37 : vector<1x16xf32> to vector<16x16xf32>
    %40 = vector.broadcast %38 : vector<16x1xf32> to vector<16x16xf32>
    %41 = arith.addf %39, %40 : vector<16x16xf32>
    %cst_14 = arith.constant 0.000000e+00 : f32
    %42 = vector.broadcast %cst_14 : f32 to vector<16x16xf32>
    %43 = arith.cmpf ogt, %41, %42 : vector<16x16xf32>
    %cst_15 = arith.constant 2.000000e-01 : f32
    %44 = vector.broadcast %cst_15 : f32 to vector<16x16xf32>
    %45 = arith.mulf %44, %41 : vector<16x16xf32>
    %46 = arith.select %43, %41, %45 : vector<16x16xi1>, vector<16x16xf32>
    %47 = arith.mulf %46, %1 : vector<16x16xf32>
    %48 = arith.addf %47, %5 : vector<16x16xf32>
    %cst_16 = arith.constant dense<0xFF800000> : vector<16xf32>
    %49 = vector.multi_reduction <maximumf>, %48, %cst_16 [1] : vector<16x16xf32> to vector<16xf32>
    %50 = vector.shape_cast %49 : vector<16xf32> to vector<16x1xf32>
    %51 = vector.broadcast %50 : vector<16x1xf32> to vector<16x16xf32>
    %52 = arith.subf %48, %51 : vector<16x16xf32>
    %53 = math.exp %52 : vector<16x16xf32>
    %54 = arith.mulf %53, %1 : vector<16x16xf32>
    %cst_17 = arith.constant dense<0.000000e+00> : vector<16xf32>
    %55 = vector.multi_reduction <add>, %54, %cst_17 [1] : vector<16x16xf32> to vector<16xf32>
    %56 = vector.shape_cast %55 : vector<16xf32> to vector<16x1xf32>
    %cst_18 = arith.constant 9.99999968E-21 : f32
    %57 = vector.broadcast %cst_18 : f32 to vector<16x1xf32>
    %58 = arith.maximumf %56, %57 : vector<16x1xf32>
    %59 = tpu.reciprocal %58 {approx = true} : vector<16x1xf32> -> vector<16x1xf32>
    %60 = vector.extract_strided_slice %6 {offsets = [0, 4], sizes = [16, 4], strides = [1, 1]} : vector<16x12xbf16> to vector<16x4xbf16>
    %61 = arith.truncf %54 : vector<16x16xf32> to vector<16x16xbf16>
    %cst_19 = arith.constant dense<0.000000e+00> : vector<16x4xf32>
    %62 = tpu.matmul %61, %60, %cst_19 {dimension_numbers = #tpu.dot_dimension_numbers<[1], [0], [0], [1], [0, 0, 1, 1], [], []>} : vector<16x16xbf16>, vector<16x4xbf16>, vector<16x4xf32> -> vector<16x4xf32>
    %63 = vector.broadcast %59 : vector<16x1xf32> to vector<16x4xf32>
    %64 = arith.mulf %62, %63 : vector<16x4xf32>
    %65 = vector.extract_strided_slice %7 {offsets = [2, 0], sizes = [1, 16], strides = [1, 1]} : vector<3x16xf32> to vector<1x16xf32>
    %66 = vector.extract_strided_slice %8 {offsets = [0, 2], sizes = [16, 1], strides = [1, 1]} : vector<16x3xf32> to vector<16x1xf32>
    %67 = vector.broadcast %65 : vector<1x16xf32> to vector<16x16xf32>
    %68 = vector.broadcast %66 : vector<16x1xf32> to vector<16x16xf32>
    %69 = arith.addf %67, %68 : vector<16x16xf32>
    %cst_20 = arith.constant 0.000000e+00 : f32
    %70 = vector.broadcast %cst_20 : f32 to vector<16x16xf32>
    %71 = arith.cmpf ogt, %69, %70 : vector<16x16xf32>
    %cst_21 = arith.constant 2.000000e-01 : f32
    %72 = vector.broadcast %cst_21 : f32 to vector<16x16xf32>
    %73 = arith.mulf %72, %69 : vector<16x16xf32>
    %74 = arith.select %71, %69, %73 : vector<16x16xi1>, vector<16x16xf32>
    %75 = arith.mulf %74, %1 : vector<16x16xf32>
    %76 = arith.addf %75, %5 : vector<16x16xf32>
    %cst_22 = arith.constant dense<0xFF800000> : vector<16xf32>
    %77 = vector.multi_reduction <maximumf>, %76, %cst_22 [1] : vector<16x16xf32> to vector<16xf32>
    %78 = vector.shape_cast %77 : vector<16xf32> to vector<16x1xf32>
    %79 = vector.broadcast %78 : vector<16x1xf32> to vector<16x16xf32>
    %80 = arith.subf %76, %79 : vector<16x16xf32>
    %81 = math.exp %80 : vector<16x16xf32>
    %82 = arith.mulf %81, %1 : vector<16x16xf32>
    %cst_23 = arith.constant dense<0.000000e+00> : vector<16xf32>
    %83 = vector.multi_reduction <add>, %82, %cst_23 [1] : vector<16x16xf32> to vector<16xf32>
    %84 = vector.shape_cast %83 : vector<16xf32> to vector<16x1xf32>
    %cst_24 = arith.constant 9.99999968E-21 : f32
    %85 = vector.broadcast %cst_24 : f32 to vector<16x1xf32>
    %86 = arith.maximumf %84, %85 : vector<16x1xf32>
    %87 = tpu.reciprocal %86 {approx = true} : vector<16x1xf32> -> vector<16x1xf32>
    %88 = vector.extract_strided_slice %6 {offsets = [0, 8], sizes = [16, 4], strides = [1, 1]} : vector<16x12xbf16> to vector<16x4xbf16>
    %89 = arith.truncf %82 : vector<16x16xf32> to vector<16x16xbf16>
    %cst_25 = arith.constant dense<0.000000e+00> : vector<16x4xf32>
    %90 = tpu.matmul %89, %88, %cst_25 {dimension_numbers = #tpu.dot_dimension_numbers<[1], [0], [0], [1], [0, 0, 1, 1], [], []>} : vector<16x16xbf16>, vector<16x4xbf16>, vector<16x4xf32> -> vector<16x4xf32>
    %91 = vector.broadcast %87 : vector<16x1xf32> to vector<16x4xf32>
    %92 = arith.mulf %90, %91 : vector<16x4xf32>
    %93 = tpu.concatenate %36, %64, %92 in 1 : vector<16x4xf32>, vector<16x4xf32>, vector<16x4xf32> -> vector<16x12xf32>
    %c0_26 = arith.constant 0 : index
    %c0_27 = arith.constant 0 : index
    %94 = vector.load %arg5[%c0_26, %c0_27] : memref<16x12xf32, #tpu.memory_space<vmem>>, vector<16x12xf32>
    tpu.vector_store %arg5[%c0_26, %c0_27], %93 {strides = array<i32>} : memref<16x12xf32, #tpu.memory_space<vmem>>, vector<16x12xf32>,
    return
  }
  func.func @transform_0(%arg0: i32) -> (i32, i32) {
    %c0_i32 = arith.constant 0 : i32
    %c0_i32_0 = arith.constant 0 : i32
    %c0_i32_1 = arith.constant 0 : i32
    return %c0_i32, %c0_i32_0 : i32, i32
  }
  func.func @transform_1(%arg0: i32) -> (i32, i32) {
    %c0_i32 = arith.constant 0 : i32
    %c0_i32_0 = arith.constant 0 : i32
    %c0_i32_1 = arith.constant 0 : i32
    return %c0_i32, %c0_i32_0 : i32, i32
  }
  func.func @transform_2(%arg0: i32) -> (i32, i32) {
    %c0_i32 = arith.constant 0 : i32
    %c0_i32_0 = arith.constant 0 : i32
    return %arg0, %c0_i32 : i32, i32
  }
  func.func @transform_3(%arg0: i32) -> (i32, i32) {
    %c0_i32 = arith.constant 0 : i32
    %c0_i32_0 = arith.constant 0 : i32
    return %arg0, %c0_i32 : i32, i32
  }
  func.func @transform_4(%arg0: i32) -> (i32, i32) {
    %c0_i32 = arith.constant 0 : i32
    %c0_i32_0 = arith.constant 0 : i32
    return %arg0, %c0_i32 : i32, i32
  }
}

</mosaic_0001>

<bundles_post_ra>
// kernel: _lambda_.6
= control target key start
LH: loop header
LB: loop body
LE: loop exit
PB: predicated region body
PF: predicated region fallthrough
CT: control target
= control target key end

     0   :  { %vm29_vm0 = vcmask 1043456   ;;  %v312_v0 = vmov 0.0   ;;  %vm313_vm1 = vmmov 0   ;;  %vm25_vm2 = vcmask 64512   ;;  %s394_s1 = inlined_call_operand.vmem [shape: bf16[8,24], index: 1, kind: input, shape index: {}]   ;;  %s395_s0 = inlined_call_operand.vmem [shape: f32[16,8], index: 0, kind: input, shape index: {}]   ;;  %s396_s3 = inlined_call_operand.vmem [shape: f32[24,3], index: 3, kind: input, shape index: {}]   ;;  %s397_s2 = inlined_call_operand.vmem [shape: f32[24,3], index: 2, kind: input, shape index: {}]   ;;  %s398_s4 = inlined_call_operand.vmem [shape: bf16[16,24], index: 4, kind: output, shape index: {0}]   ;;  %s399_s5 = inlined_call_operand.vmem [shape: f32[16,3], index: 5, kind: output, shape index: {1}]   ;;  %s400_s6 = inlined_call_operand.vmem [shape: f32[16,3], index: 6, kind: output, shape index: {2}]  }
   0x1   :  { %286 = vmatprep.subr.bf16.mxu0 %v312_v0  ;;  %v24_v1 = vld [vmem:[%s394_s1] sm:$0xf]  ;;  %288 = vmatprep.mubr.msk.bf16.mxu0 %vm313_vm1, %v312_v0  ;;  %v22_v3 = vld [vmem:[%s395_s0 + $0x8] sm:$0xff]  ;;  %v164_v6 = vld [vmem:[%s396_s3 + $0x10] sm:$0xff]  ;;  %vm77_vm3 = vcmask 195584   ;;  %vm250_vm4 = vcmask 191488  }
   0x2   :  { %v21_v2 = vld [vmem:[%s395_s0] sm:$0xff]  ;;  %v31_v4 = vsel %vm29_vm0, %v24_v1, 0  ;;  %v76_v7 = vld [vmem:[%s397_s2 + $0x10] sm:$0xff]  ;;  %v163_v8 = vld [vmem:[%s396_s3 + $0x8] sm:$0xff]  ;;  %vm159_vm5 = vcmask 23552  }
   0x3   :  { %v23_v5 = vpack.c.bf16 %v22_v3, %v21_v2  ;;  %287 = vmatpush3.bf16.msra.mxu0 %v31_v4  ;;  %292 = vmatprep.subr.mxu1 %v76_v7  ;;  %v75_v9 = vld [vmem:[%s397_s2 + $0x8] sm:$0xff]  ;;  %v162_v10 = vld [vmem:[%s396_s3] sm:$0xff] }
   0x4   :  { %301 = vmatprep.subr.mxu0 %v164_v6  ;;  %293 = vmatpush3.msra.mxu1 %v76_v7  ;;  %v74_v11 = vld [vmem:[%s397_s2] sm:$0xff] }
   0x5   :  { %294 = vmatprep.subr.mxu1 %v75_v9 }
   0x6   :  { %289 = vmatmul.mubr.msk.bf16.vlgmr.msra.gmra.mxu0 %vm25_vm2, %v23_v5  ;;  %295 = vmatpush3.msra.mxu1 %v75_v9 }
   0x7   :  { %302 = vmatpush3.msra.mxu0 %v164_v6  ;;  %296 = vmatprep.subr.mxu1 %v74_v11 }
   0x8   :  { %303 = vmatprep.subr.mxu0 %v163_v8  ;;  %297 = vmatpush3.msra.mxu1 %v74_v11 }
   0x9   :  { %304 = vmatpush3.msra.mxu0 %v163_v8 }
   0xa   :  { %305 = vmatprep.subr.mxu0 %v162_v10 }
   0xb   :  { %306 = vmatpush3.msra.mxu0 %v162_v10 }
  0xc6   :  { %v67_v12 = vpop.f32.mrf.mxu0 }
  0xc7   :  { %v272_v13 = vpack.c.bf16 %v67_v12, %v67_v12  ;;  %298 = vmatprep.mubr.msk.f32.mxu1 %vm77_vm3, %v67_v12  ;;  %307 = vmatprep.mubr.msk.f32.mxu0 %vm77_vm3, %v67_v12 }
  0xc8   :  { %v290_v14 = vpop.f32.mrf.mxu0 }
  0xc9   :  { %251 = vst.msk [vmem:[%s398_s4] sm:$0xf] %vm250_vm4, %v272_v13 }
  0xca   :  { %v70_v15 = vpop.f32.mrf.mxu0 }
  0xcb   :  { %v273_v16 = vpack.c.bf16 %v70_v15, %v70_v15  ;;  %299 = vmatmul.mubr.msk.f32.vlgmr.msra.gmra.mxu1 %vm77_vm3, %v70_v15  ;;  %308 = vmatmul.mubr.msk.f32.vlgmr.msra.gmra.mxu0 %vm77_vm3, %v70_v15 }
  0xcc   :  { %v291_v17 = vpop.f32.mrf.mxu0 }
  0xcd   :  { %252 = vst.msk [vmem:[%s398_s4 + $0x4] sm:$0xf] %vm250_vm4, %v273_v16 }
 0x18b   :  { %v300_v18 = vpop.f32.mrf.mxu1  ;;  %v309_v19 = vpop.f32.mrf.mxu0 }
 0x18c   :  { %161 = vst.msk [vmem:[%s399_s5 + $0x8] sm:$0xff] %vm159_vm5, %v300_v18  ;;  %241 = vst.msk [vmem:[%s400_s6 + $0x8] sm:$0xff] %vm159_vm5, %v309_v19 }
 0x18d   :  { %v150_v20 = vpop.f32.mrf.mxu1  ;;  %v231_v21 = vpop.f32.mrf.mxu0 }
 0x18e   :  { %160 = vst.msk [vmem:[%s399_s5] sm:$0xff] %vm159_vm5, %v150_v20  ;;  %240 = vst.msk [vmem:[%s400_s6] sm:$0xff] %vm159_vm5, %v231_v21 }

// kernel: _lambda_.8
= control target key start
LH: loop header
LB: loop body
LE: loop exit
PB: predicated region body
PF: predicated region fallthrough
CT: control target
= control target key end

     0   :  { %vm40_vm0 = vcmask 1043456   ;;  %v329_v0 = vmov 0.0   ;;  %vm330_vm1 = vmmov 0   ;;  %vm36_vm2 = vcmask 195584   ;;  %s419_s1 = inlined_call_operand.vmem [shape: bf16[24,24], index: 1, kind: input, shape index: {}]   ;;  %s420_s2 = inlined_call_operand.vmem [shape: f32[24,3], index: 2, kind: input, shape index: {}]   ;;  %s421_s0 = inlined_call_operand.vmem [shape: f32[16,24], index: 0, kind: input, shape index: {}]   ;;  %s422_s3 = inlined_call_operand.vmem [shape: f32[24,3], index: 3, kind: input, shape index: {}]   ;;  %s423_s4 = inlined_call_operand.vmem [shape: bf16[16,24], index: 4, kind: output, shape index: {0}]   ;;  %s424_s5 = inlined_call_operand.vmem [shape: f32[16,3], index: 5, kind: output, shape index: {1}]   ;;  %s425_s6 = inlined_call_operand.vmem [shape: f32[16,3], index: 6, kind: output, shape index: {2}]  }
   0x1   :  { %299 = vmatprep.subr.bf16.mxu0 %v329_v0  ;;  %v327_v1 = vld [vmem:[%s419_s1 + $0x8] ss:$0 sps:$4 sm:$0xff]   ;;  %303 = vmatprep.mubr.msk.bf16.mxu0 %vm330_vm1, %v329_v0  ;;  %v87_v3 = vld [vmem:[%s420_s2 + $0x10] sm:$0xff]  ;;  %v328_v4 = vld [vmem:[%s419_s1] sm:$0xff]   ;;  %vm260_vm3 = vcmask 191488   ;;  %vm169_vm4 = vcmask 23552  }
   0x2   :  { %v42_v2 = vsel %vm40_vm0, %v327_v1, 0  ;;  %v21_v5 = vld [vmem:[%s421_s0] sm:$0xff]  ;;  %v22_v6 = vld [vmem:[%s421_s0 + $0x8] sm:$0xff]  ;;  %307 = vmatprep.subr.mxu1 %v87_v3  ;;  %v174_v10 = vld [vmem:[%s422_s3 + $0x10] sm:$0xff] }
   0x3   :  { %300 = vmatpush3.bf16.msra.mxu0 %v42_v2  ;;  %308 = vmatpush3.msra.mxu1 %v87_v3  ;;  %v23_v7 = vpack.c.bf16 %v22_v6, %v21_v5  ;;  %v86_v8 = vld [vmem:[%s420_s2 + $0x8] sm:$0xff]  ;;  %v85_v9 = vld [vmem:[%s420_s2] sm:$0xff] }
   0x4   :  { %301 = vmatprep.subr.bf16.mxu0 %v329_v0  ;;  %309 = vmatprep.subr.mxu1 %v86_v8  ;;  %v173_v15 = vld [vmem:[%s422_s3 + $0x8] sm:$0xff]  ;;  %v172_v18 = vld [vmem:[%s422_s3] sm:$0xff] }
   0x5   :  { %310 = vmatpush3.msra.mxu1 %v86_v8 }
   0x6   :  { %311 = vmatprep.subr.mxu1 %v85_v9 }
   0x7   :  { %302 = vmatpush3.bf16.msra.mxu0 %v328_v4  ;;  %312 = vmatpush3.msra.mxu1 %v85_v9 }
   0x8   :  { %316 = vmatprep.subr.mxu1 %v174_v10 }
   0xa   :  { %304 = vmatmul.mubr.msk.bf16.vlgmr.msra.gmra.mxu0 %vm36_vm2, %v23_v7 }
  0xca   :  { %v78_v11 = vpop.f32.mrf.mxu0 }
  0xcb   :  { %v284_v12 = vpack.c.bf16 %v78_v11, %v78_v11  ;;  %313 = vmatprep.mubr.msk.f32.mxu1 %vm36_vm2, %v78_v11 }
  0xcc   :  { %v305_v13 = vpop.f32.mrf.mxu0 }
  0xcd   :  { %261 = vst.msk [vmem:[%s423_s4] sm:$0xf] %vm260_vm3, %v284_v12 }
  0xce   :  { %v81_v14 = vpop.f32.mrf.mxu0 }
  0xcf   :  { %v285_v16 = vpack.c.bf16 %v81_v14, %v81_v14  ;;  %314 = vmatmul.mubr.msk.f32.vlgmr.msra.gmra.mxu1 %vm36_vm2, %v81_v14 }
  0xd0   :  { %317 = vmatpush3.msra.mxu1 %v174_v10  ;;  %v306_v17 = vpop.f32.mrf.mxu0  ;;  %322 = vmatprep.mubr.msk.f32.mxu1 %vm36_vm2, %v78_v11 }
  0xd1   :  { %262 = vst.msk [vmem:[%s423_s4 + $0x4] sm:$0xf] %vm260_vm3, %v285_v16  ;;  %318 = vmatprep.subr.mxu1 %v173_v15 }
  0xd2   :  { %319 = vmatpush3.msra.mxu1 %v173_v15 }
  0xd3   :  { %320 = vmatprep.subr.mxu1 %v172_v18 }
  0xd4   :  { %321 = vmatpush3.msra.mxu1 %v172_v18 }
  0xd5   :  { %323 = vmatmul.mubr.msk.f32.vlgmr.msra.gmra.mxu1 %vm36_vm2, %v81_v14 }
 0x18f   :  { %v315_v19 = vpop.f32.mrf.mxu1 }
 0x190   :  { %171 = vst.msk [vmem:[%s424_s5 + $0x8] sm:$0xff] %vm169_vm4, %v315_v19 }
 0x191   :  { %v160_v20 = vpop.f32.mrf.mxu1 }
 0x192   :  { %170 = vst.msk [vmem:[%s424_s5] sm:$0xff] %vm169_vm4, %v160_v20 }
 0x195   :  { %v324_v21 = vpop.f32.mrf.mxu1 }
 0x196   :  { %251 = vst.msk [vmem:[%s425_s6 + $0x8] sm:$0xff] %vm169_vm4, %v324_v21 }
 0x197   :  { %v241_v22 = vpop.f32.mrf.mxu1 }
 0x198   :  { %250 = vst.msk [vmem:[%s425_s6] sm:$0xff] %vm169_vm4, %v241_v22 }

// kernel: _lambda_.7
= control target key start
LH: loop header
LB: loop body
LE: loop exit
PB: predicated region body
PF: predicated region fallthrough
CT: control target
= control target key end

     0   :  { %v439_v0 = vmov 1   ;;  %v440_v1 = vmov 0   ;;  %v441_v4 = vmov 2   ;;  %v33_v5 = vlaneseq  ;;  %s445_s23 = smov 120   ;;  %s447_s24 = smov 16   ;;  %s532_s2 = inlined_call_operand.vmem [shape: f32[16,3], index: 2, kind: input, shape index: {}]   ;;  %s533_s0 = inlined_call_operand.vmem [shape: bf16[16,24], index: 0, kind: input, shape index: {}]   ;;  %s534_s3 = inlined_call_operand.vmem [shape: s8[16,16], index: 3, kind: input, shape index: {}]   ;;  %s535_s1 = inlined_call_operand.vmem [shape: f32[3,16], index: 1, kind: input, shape index: {}]   ;;  %s536_s4 = inlined_call_operand.vmem [shape: f32[16,24], index: 4, kind: output, shape index: {}]  }
   0x1   :  { %411 = vset.pattern.permute.xlu1 %v439_v0  ;;  %410 = vset.pattern.permute.xlu0 %v440_v1  ;;  %v31_v2 = vld [vmem:[%s532_s2] sm:$0xff]  ;;  %v32_v3 = vld [vmem:[%s532_s2 + $0x8] sm:$0xff]  ;;  %vm59_vm2 = vcmask 130048   ;;  %vm444_vm7 = vmmov 0   ;;  %vm355_vm8 = vcmask 64512   ;;  %vm360_vm9 = vcmask 195584  }
   0x2   :  { %144 = vperm.xlu1 %411, %v31_v2   ;;  %39 = vperm.xlu0 %410, %v31_v2   ;;  %v34_v6 = vshrl.u32 %v33_v5, 7  ;;  %v374_v7 = vld [vmem:[%s534_s3] sm:$0xf]   ;;  %s442_s3 = smov 112  }
   0x3   :  { %v375_v8 = vunpack.c.0.s8 %v374_v7  ;;  %v30_v11 = vld [vmem:[%s535_s1] sm:$0x7]  ;;  %v376_v15 = vunpack.c.1.s8 %v374_v7 }
   0x4   :  { %v141_v9 = vsub.s32 1, %v34_v6  ;;  %v35_v10 = vsub.s32 0, %v34_v6  ;;  %v241_v22 = vsub.s32 2, %v34_v6  ;;  %v414_v1 = vld [vmem:[%s533_s0] sm:$0xff]   ;;  %s446_s0 = smov 8  }
   0x5   :  { %v485_v12 = vcvt.s32.f32 %v375_v8  ;;  %v488_v21 = vcvt.s32.f32 %v376_v15 }
   0x6   :  { %148 = vperm.xlu1 %411, %v32_v3   ;;  %44 = vperm.xlu0 %410, %v32_v3   ;;  %v142_v13 = vrot.slane %v30_v11, %v141_v9  ;;  %v36_v14 = vrot.slane %v30_v11, %v35_v10  ;;  %v242_v33 = vrot.slane %v30_v11, %v241_v22 }
   0x7   :  { %v367_v18 = vadd.f32 -1.0, %v485_v12  ;;  %v368_v31 = vadd.f32 -1.0, %v488_v21 }
   0x9   :  { %v26_v27 = vmul.f32 1e+30, %v367_v18  ;;  %v27_v42 = vmul.f32 1e+30, %v368_v31 }
   0xa   :  { %413 = vset.pattern.permute.xlu1 %v441_v4  ;;  %412 = vset.pattern.permute.xlu0 %v441_v4 }
   0xb   :  { %248 = vperm.xlu1 %413, %v32_v3   ;;  %244 = vperm.xlu0 %412, %v31_v2   ;;  %v443_v2 = vmov 0.0  }
   0xc   :  { %383 = vmatprep.subr.bf16.mxu0 %v443_v2  ;;  %385 = vmatprep.mubr.msk.bf16.mxu0 %vm444_vm7, %v443_v2 }
   0xd   :  { %384 = vmatpush3.bf16.msra.mxu0 %v414_v1  ;;  %389 = vmatprep.subr.bf16.mxu1 %v443_v2 }
   0xe   :  { %395 = vmatprep.subr.bf16.mxu0 %v443_v2  ;;  %391 = vmatprep.mubr.msk.bf16.mxu1 %vm444_vm7, %v443_v2 }
  0x7d   :  { %v145_v16 = vpop.permute.xlu1 %144  ;;  %v40_v17 = vpop.permute.xlu0 %39 }
  0x7e   :  { %v151_v19 = vadd.f32 %v145_v16, %v142_v13  ;;  %v47_v20 = vadd.f32 %v40_v17, %v36_v14 }
  0x80   :  { %vm153_vm0 = vcmp.gt.f32.partialorder %v151_v19, 0.0  ;;  %v155_v23 = vmul.f32 0.2, %v151_v19  ;;  %vm49_vm1 = vcmp.gt.f32.partialorder %v47_v20, 0.0  ;;  %v51_v24 = vmul.f32 0.2, %v47_v20 }
  0x81   :  { %v149_v25 = vpop.permute.xlu1 %148  ;;  %v45_v26 = vpop.permute.xlu0 %44 }
  0x82   :  { %v53_v28 = vsel %vm49_vm1, %v47_v20, %v51_v24  ;;  %v152_v29 = vadd.f32 %v149_v25, %v142_v13  ;;  %v48_v30 = vadd.f32 %v45_v26, %v36_v14  ;;  %v157_v32 = vsel %vm153_vm0, %v151_v19, %v155_v23 }
  0x83   :  { %v55_v34 = vmul.f32 %v53_v28, %v485_v12  ;;  %v159_v43 = vmul.f32 %v157_v32, %v485_v12 }
  0x84   :  { %vm154_vm3 = vcmp.gt.f32.partialorder %v152_v29, 0.0  ;;  %v156_v35 = vmul.f32 0.2, %v152_v29  ;;  %vm50_vm4 = vcmp.gt.f32.partialorder %v48_v30, 0.0  ;;  %v52_v36 = vmul.f32 0.2, %v48_v30 }
  0x85   :  { %v57_v37 = vadd.f32 %v55_v34, %v26_v27  ;;  %v161_v55 = vadd.f32 %v159_v43, %v26_v27 }
  0x86   :  { %v158_v38 = vsel %vm154_vm3, %v152_v29, %v156_v35  ;;  %v54_v39 = vsel %vm50_vm4, %v48_v30, %v52_v36  ;;  %v249_v40 = vpop.permute.xlu1 %248  ;;  %v245_v41 = vpop.permute.xlu0 %244 }
  0x87   :  { %v252_v44 = vadd.f32 %v249_v40, %v242_v33  ;;  %v251_v45 = vadd.f32 %v245_v41, %v242_v33  ;;  %v60_v46 = vsel %vm59_vm2, %v57_v37, -inf  ;;  %v56_v47 = vmul.f32 %v54_v39, %v488_v21 }
  0x88   :  { %61 = vmax.xlane.f32.xlu1 %v60_v46  ;;  %v160_v48 = vmul.f32 %v158_v38, %v488_v21  ;;  %v163_v61 = vsel %vm59_vm2, %v161_v55, -inf }
  0x89   :  { %vm254_vm5 = vcmp.gt.f32.partialorder %v252_v44, 0.0  ;;  %v256_v49 = vmul.f32 0.2, %v252_v44  ;;  %vm253_vm6 = vcmp.gt.f32.partialorder %v251_v45, 0.0  ;;  %v255_v50 = vmul.f32 0.2, %v251_v45 }
  0x8a   :  { %v58_v51 = vadd.f32 %v56_v47, %v27_v42  ;;  %v162_v52 = vadd.f32 %v160_v48, %v27_v42 }
  0x8b   :  { %v258_v53 = vsel %vm254_vm5, %v252_v44, %v256_v49  ;;  %v257_v54 = vsel %vm253_vm6, %v251_v45, %v255_v50 }
  0x8c   :  { %v63_v56 = vsel %vm59_vm2, %v58_v51, -inf  ;;  %v166_v57 = vsel %vm59_vm2, %v162_v52, -inf  ;;  %v260_v58 = vmul.f32 %v258_v53, %v488_v21  ;;  %v259_v59 = vmul.f32 %v257_v54, %v485_v12 }
  0x8d   :  { %64 = vmax.xlane.f32.xlu0 %v63_v56  ;;  %167 = vmax.xlane.f32.xlu1 %v166_v57 }
  0x8e   :  { %v262_v60 = vadd.f32 %v260_v58, %v27_v42  ;;  %v261_v63 = vadd.f32 %v259_v59, %v26_v27 }
  0x90   :  { %v266_v62 = vsel %vm59_vm2, %v262_v60, -inf  ;;  %v263_v0 = vsel %vm59_vm2, %v261_v63, -inf }
  0x91   :  { %164 = vmax.xlane.f32.xlu0 %v163_v61  ;;  %267 = vmax.xlane.f32.xlu1 %v266_v62 }
  0x95   :  { %264 = vmax.xlane.f32.xlu0 %v263_v0 }
  0xa2   :  { %288 = vrot.lane.b32.xlu1 %v414_v1, %s442_s3 }
  0xab   :  { %188 = vrot.lane.b32.xlu0 %v414_v1, %s445_s23 }
 0x111   :  { %v62_v3 = vpop.xlane.xlu1 %61 }
 0x112   :  { %v66_v4 = vsub.f32 %v57_v37, %v62_v3 }
 0x114   :  { %v68_v5 = vmul.f32 1.442695, %v66_v4 }
 0x116   :  { %v65_v6 = vpop.xlane.xlu0 %64  ;;  %v168_v7 = vpop.xlane.xlu1 %167  ;;  %415 = vpow2.f32 %v68_v5 }
 0x117   :  { %v67_v8 = vsub.f32 %v58_v51, %v65_v6  ;;  %v170_v9 = vsub.f32 %v162_v52, %v168_v7 }
 0x119   :  { %v70_v10 = vmul.f32 1.442695, %v67_v8  ;;  %v173_v11 = vmul.f32 1.442695, %v170_v9 }
 0x11a   :  { %v165_v13 = vpop.xlane.xlu0 %164  ;;  %v268_v14 = vpop.xlane.xlu1 %267 }
 0x11b   :  { %417 = vpow2.f32 %v70_v10  ;;  %v169_v15 = vsub.f32 %v161_v55, %v165_v13  ;;  %v270_v16 = vsub.f32 %v262_v60, %v268_v14 }
 0x11c   :  { %419 = vpow2.f32 %v173_v11 }
 0x11d   :  { %v171_v17 = vmul.f32 1.442695, %v169_v15  ;;  %v273_v18 = vmul.f32 1.442695, %v270_v16 }
 0x11e   :  { %v265_v19 = vpop.xlane.xlu0 %264  ;;  %v289_v30 = vpop.permute.xlu1 %288 }
 0x11f   :  { %421 = vpow2.f32 %v171_v17  ;;  %v269_v20 = vsub.f32 %v261_v63, %v265_v19 }
 0x120   :  { %423 = vpow2.f32 %v273_v18 }
 0x121   :  { %v271_v22 = vmul.f32 1.442695, %v269_v20 }
 0x122   :  { %v189_v23 = vpop.permute.xlu0 %188 }
 0x123   :  { %425 = vpow2.f32 %v271_v22  ;;  %390 = vmatpush3.bf16.msra.mxu1 %v189_v23  ;;  %v416_v24 = vpop.eup %415 }
 0x124   :  { %v72_v27 = vmul.f32 %v416_v24, %v485_v12 }
 0x126   :  { %v74_v45 = vsel %vm59_vm2, %v72_v27, 0.0 }
 0x128   :  { %v418_v25 = vpop.eup %417 }
 0x129   :  { %v420_v26 = vpop.eup %419  ;;  %v73_v28 = vmul.f32 %v418_v25, %v488_v21 }
 0x12a   :  { %v176_v29 = vmul.f32 %v420_v26, %v488_v21 }
 0x12b   :  { %v84_v31 = vpack.c.bf16 %v73_v28, %v72_v27  ;;  %v77_v44 = vsel %vm59_vm2, %v73_v28, 0.0 }
 0x12c   :  { %v422_v32 = vpop.eup %421  ;;  %v180_v33 = vsel %vm59_vm2, %v176_v29, 0.0 }
 0x12d   :  { %v424_v34 = vpop.eup %423  ;;  %181 = vadd.xlane.f32.xlu0 %v180_v33  ;;  %386 = vmatmul.mubr.msk.bf16.vlgmr.msra.gmra.mxu0 %vm59_vm2, %v84_v31  ;;  %v175_v35 = vmul.f32 %v422_v32, %v485_v12 }
 0x12e   :  { %396 = vmatpush3.bf16.msra.mxu0 %v289_v30  ;;  %397 = vmatprep.mubr.msk.bf16.mxu0 %vm444_vm7, %v443_v2  ;;  %v276_v38 = vmul.f32 %v424_v34, %v488_v21 }
 0x12f   :  { %v177_v36 = vsel %vm59_vm2, %v175_v35, 0.0  ;;  %v187_v37 = vpack.c.bf16 %v176_v29, %v175_v35 }
 0x130   :  { %v426_v39 = vpop.eup %425  ;;  %178 = vadd.xlane.f32.xlu1 %v177_v36  ;;  %v280_v41 = vsel %vm59_vm2, %v276_v38, 0.0 }
 0x131   :  { %392 = vmatmul.mubr.msk.bf16.vlgmr.msra.gmra.mxu1 %vm59_vm2, %v187_v37  ;;  %v275_v40 = vmul.f32 %v426_v39, %v485_v12 }
 0x133   :  { %v277_v42 = vsel %vm59_vm2, %v275_v40, 0.0  ;;  %v287_v43 = vpack.c.bf16 %v276_v38, %v275_v40 }
 0x134   :  { %281 = vadd.xlane.f32.xlu1 %v280_v41  ;;  %278 = vadd.xlane.f32.xlu0 %v277_v42 }
 0x135   :  { %398 = vmatmul.mubr.msk.bf16.vlgmr.msra.gmra.mxu0 %vm59_vm2, %v287_v43 }
 0x138   :  { %78 = vadd.xlane.f32.xlu1 %v77_v44  ;;  %75 = vadd.xlane.f32.xlu0 %v74_v45 }
 0x1b6   :  { %v182_v46 = vpop.xlane.xlu0 %181 }
 0x1b7   :  { %v184_v12 = vmax.f32 %v182_v46, 1e-20 }
 0x1b9   :  { %v179_v21 = vpop.xlane.xlu1 %178 }
 0x1ba   :  { %v183_v47 = vmax.f32 %v179_v21, 1e-20 }
 0x1bc   :  { %427 = vrcp.f32 %v183_v47 }
 0x1bd   :  { %v279_v48 = vpop.xlane.xlu0 %278  ;;  %v282_v49 = vpop.xlane.xlu1 %281  ;;  %429 = vrcp.f32 %v184_v12 }
 0x1be   :  { %v283_v50 = vmax.f32 %v279_v48, 1e-20  ;;  %v284_v51 = vmax.f32 %v282_v49, 1e-20 }
 0x1c0   :  { %431 = vrcp.f32 %v283_v50 }
 0x1c1   :  { %433 = vrcp.f32 %v284_v51  ;;  %v79_v13 = vpop.xlane.xlu1 %78  ;;  %v76_v14 = vpop.xlane.xlu0 %75 }
 0x1c2   :  { %v81_v15 = vmax.f32 %v79_v13, 1e-20  ;;  %v80_v16 = vmax.f32 %v76_v14, 1e-20 }
 0x1c4   :  { %435 = vrcp.f32 %v81_v15 }
 0x1c5   :  { %437 = vrcp.f32 %v80_v16 }
 0x1c9   :  { %v428_v54 = vpop.eup %427 }
 0x1ca   :  { %v430_v61 = vpop.eup %429 }
 0x1cd   :  { %v432_v1 = vpop.eup %431 }
 0x1ce   :  { %v434_v6 = vpop.eup %433 }
 0x1d1   :  { %v436_v17 = vpop.eup %435 }
 0x1d2   :  { %v438_v18 = vpop.eup %437 }
 0x1ed   :  { %v128_v52 = vpop.f32.mrf.mxu0 }
 0x1ee   :  { %v135_v19 = vmul.f32 %v438_v18, %v128_v52 }
 0x1ef   :  { %v387_v53 = vpop.f32.mrf.mxu0 }
 0x1f0   :  { %v137_v24 = vmax.f32 %v135_v19, 0.0 }
 0x1f1   :  { %v131_v55 = vpop.f32.mrf.mxu0  ;;  %v228_v56 = vpop.f32.mrf.mxu1 }
 0x1f2   :  { %v235_v57 = vmul.f32 %v428_v54, %v228_v56  ;;  %v136_v20 = vmul.f32 %v436_v17, %v131_v55 }
 0x1f3   :  { %v388_v58 = vpop.f32.mrf.mxu0  ;;  %v393_v59 = vpop.f32.mrf.mxu1 }
 0x1f4   :  { %v237_v60 = vmax.f32 %v235_v57, 0.0  ;;  %v138_v25 = vmax.f32 %v136_v20, 0.0 }
 0x1f5   :  { %v231_v62 = vpop.f32.mrf.mxu1  ;;  %v328_v63 = vpop.f32.mrf.mxu0 }
 0x1f6   :  { %v236_v0 = vmul.f32 %v430_v61, %v231_v62  ;;  %341 = vrot.lane.b32.xlu0 %v237_v60, %s446_s0  ;;  %v335_v5 = vmul.f32 %v432_v1, %v328_v63 }
 0x1f7   :  { %v394_v2 = vpop.f32.mrf.mxu1  ;;  %v399_v3 = vpop.f32.mrf.mxu0 }
 0x1f8   :  { %v238_v4 = vmax.f32 %v236_v0, 0.0  ;;  %v337_v10 = vmax.f32 %v335_v5, 0.0 }
 0x1f9   :  { %v331_v7 = vpop.f32.mrf.mxu0 }
 0x1fa   :  { %v336_v8 = vmul.f32 %v434_v6, %v331_v7  ;;  %343 = vrot.lane.b32.xlu1 %v238_v4, %s446_s0 }
 0x1fb   :  { %v400_v9 = vpop.f32.mrf.mxu0 }
 0x1fc   :  { %v338_v11 = vmax.f32 %v336_v8, 0.0 }
 0x1fe   :  { %349 = vrot.lane.b32.xlu1 %v337_v10, %s447_s24  ;;  %351 = vrot.lane.b32.xlu0 %v338_v11, %s447_s24 }
 0x268   :  { %v342_v22 = vpop.permute.xlu0 %341 }
 0x269   :  { %v356_v26 = vsel %vm355_vm8, %v137_v24, %v342_v22 }
 0x26c   :  { %v344_v23 = vpop.permute.xlu1 %343 }
 0x26d   :  { %v357_v27 = vsel %vm355_vm8, %v138_v25, %v344_v23 }
 0x270   :  { %v350_v28 = vpop.permute.xlu1 %349  ;;  %v352_v29 = vpop.permute.xlu0 %351 }
 0x271   :  { %v358_v30 = vsel %vm59_vm2, %v356_v26, %v350_v28  ;;  %v359_v31 = vsel %vm59_vm2, %v357_v27, %v352_v29 }
 0x272   :  { %361 = vst.msk [vmem:[%s536_s4] sm:$0xff] %vm360_vm9, %v358_v30  ;;  %362 = vst.msk [vmem:[%s536_s4 + $0x8] sm:$0xff] %vm360_vm9, %v359_v31 }

// kernel: _lambda_.10
= control target key start
LH: loop header
LB: loop body
LE: loop exit
PB: predicated region body
PF: predicated region fallthrough
CT: control target
= control target key end

     0   :  { %vm40_vm0 = vcmask 1043456   ;;  %v330_v0 = vmov 0.0   ;;  %vm331_vm1 = vmmov 0   ;;  %vm36_vm2 = vcmask 195584   ;;  %s418_s1 = inlined_call_operand.vmem [shape: bf16[24,12], index: 1, kind: input, shape index: {}]   ;;  %s419_s0 = inlined_call_operand.vmem [shape: f32[16,24], index: 0, kind: input, shape index: {}]   ;;  %s420_s2 = inlined_call_operand.vmem [shape: f32[12,3], index: 2, kind: input, shape index: {}]   ;;  %s421_s3 = inlined_call_operand.vmem [shape: f32[12,3], index: 3, kind: input, shape index: {}]   ;;  %s422_s4 = inlined_call_operand.vmem [shape: bf16[16,12], index: 4, kind: output, shape index: {0}]   ;;  %s423_s5 = inlined_call_operand.vmem [shape: f32[16,3], index: 5, kind: output, shape index: {1}]   ;;  %s424_s6 = inlined_call_operand.vmem [shape: f32[16,3], index: 6, kind: output, shape index: {2}]  }
   0x1   :  { %304 = vmatprep.subr.bf16.mxu0 %v330_v0  ;;  %v328_v1 = vld [vmem:[%s418_s1 + $0x8] ss:$0 sps:$4 sm:$0xff]   ;;  %308 = vmatprep.mubr.msk.bf16.mxu0 %vm331_vm1, %v330_v0  ;;  %v329_v3 = vld [vmem:[%s418_s1] sm:$0xff]   ;;  %vm87_vm3 = vcmask 97280   ;;  %vm265_vm4 = vcmask 93184   ;;  %vm172_vm5 = vcmask 23552  }
   0x2   :  { %v42_v2 = vsel %vm40_vm0, %v328_v1, 0  ;;  %v21_v4 = vld [vmem:[%s419_s0] sm:$0xff]  ;;  %v22_v5 = vld [vmem:[%s419_s0 + $0x8] sm:$0xff] }
   0x3   :  { %305 = vmatpush3.bf16.msra.mxu0 %v42_v2  ;;  %v23_v6 = vpack.c.bf16 %v22_v5, %v21_v4  ;;  %v86_v7 = vld [vmem:[%s420_s2 + $0x8] sm:$0xf]  ;;  %v85_v8 = vld [vmem:[%s420_s2] sm:$0xff] }
   0x4   :  { %306 = vmatprep.subr.bf16.mxu0 %v330_v0  ;;  %312 = vmatprep.subr.msk.mxu1 %vm40_vm0, %v86_v7  ;;  %v176_v9 = vld [vmem:[%s421_s3 + $0x8] sm:$0xf]  ;;  %v175_v14 = vld [vmem:[%s421_s3] sm:$0xff] }
   0x5   :  { %313 = vmatpush3.msk.msra.mxu1 %vm40_vm0, %v86_v7 }
   0x6   :  { %314 = vmatprep.subr.mxu1 %v85_v8 }
   0x7   :  { %307 = vmatpush3.bf16.msra.mxu0 %v329_v3  ;;  %315 = vmatpush3.msra.mxu1 %v85_v8 }
   0x8   :  { %319 = vmatprep.subr.msk.mxu1 %vm40_vm0, %v176_v9 }
   0xa   :  { %309 = vmatmul.mubr.msk.bf16.vlgmr.msra.gmra.mxu0 %vm36_vm2, %v23_v6 }
  0xca   :  { %v78_v10 = vpop.f32.mrf.mxu0 }
  0xcb   :  { %v291_v11 = vpack.c.bf16 %v78_v10, %v78_v10  ;;  %316 = vmatprep.mubr.msk.f32.mxu1 %vm87_vm3, %v78_v10 }
  0xcc   :  { %v310_v12 = vpop.f32.mrf.mxu0 }
  0xcd   :  { %266 = vst.msk [vmem:[%s422_s4] sm:$0xf] %vm265_vm4, %v291_v11 }
  0xce   :  { %v81_v13 = vpop.f32.mrf.mxu0 }
  0xcf   :  { %v292_v15 = vpack.c.bf16 %v81_v13, %v81_v13  ;;  %317 = vmatmul.mubr.msk.f32.vlgmr.msra.gmra.mxu1 %vm87_vm3, %v81_v13 }
  0xd0   :  { %320 = vmatpush3.msk.msra.mxu1 %vm40_vm0, %v176_v9  ;;  %v311_v16 = vpop.f32.mrf.mxu0  ;;  %323 = vmatprep.mubr.msk.f32.mxu1 %vm87_vm3, %v78_v10 }
  0xd1   :  { %267 = vst.msk [vmem:[%s422_s4 + $0x4] sm:$0xf] %vm265_vm4, %v292_v15  ;;  %321 = vmatprep.subr.mxu1 %v175_v14 }
  0xd2   :  { %322 = vmatpush3.msra.mxu1 %v175_v14 }
  0xd3   :  { %324 = vmatmul.mubr.msk.f32.vlgmr.msra.gmra.mxu1 %vm87_vm3, %v81_v13 }
 0x18f   :  { %v318_v17 = vpop.f32.mrf.mxu1 }
 0x190   :  { %174 = vst.msk [vmem:[%s423_s5 + $0x8] sm:$0xff] %vm172_vm5, %v318_v17 }
 0x191   :  { %v163_v18 = vpop.f32.mrf.mxu1 }
 0x192   :  { %173 = vst.msk [vmem:[%s423_s5] sm:$0xff] %vm172_vm5, %v163_v18 }
 0x193   :  { %v325_v19 = vpop.f32.mrf.mxu1 }
 0x194   :  { %256 = vst.msk [vmem:[%s424_s6 + $0x8] sm:$0xff] %vm172_vm5, %v325_v19 }
 0x195   :  { %v246_v20 = vpop.f32.mrf.mxu1 }
 0x196   :  { %255 = vst.msk [vmem:[%s424_s6] sm:$0xff] %vm172_vm5, %v246_v20 }

// kernel: _lambda_.11
= control target key start
LH: loop header
LB: loop body
LE: loop exit
PB: predicated region body
PF: predicated region fallthrough
CT: control target
= control target key end

     0   :  { %v434_v0 = vmov 1   ;;  %v435_v1 = vmov 0   ;;  %v436_v4 = vmov 2   ;;  %v33_v5 = vlaneseq  ;;  %s440_s23 = smov 124   ;;  %s442_s24 = smov 8   ;;  %s525_s2 = inlined_call_operand.vmem [shape: f32[16,3], index: 2, kind: input, shape index: {}]   ;;  %s526_s0 = inlined_call_operand.vmem [shape: bf16[16,12], index: 0, kind: input, shape index: {}]   ;;  %s527_s3 = inlined_call_operand.vmem [shape: s8[16,16], index: 3, kind: input, shape index: {}]   ;;  %s528_s1 = inlined_call_operand.vmem [shape: f32[3,16], index: 1, kind: input, shape index: {}]   ;;  %s529_s4 = inlined_call_operand.vmem [shape: f32[16,12], index: 4, kind: output, shape index: {}]  }
   0x1   :  { %406 = vset.pattern.permute.xlu1 %v434_v0  ;;  %405 = vset.pattern.permute.xlu0 %v435_v1  ;;  %v31_v2 = vld [vmem:[%s525_s2] sm:$0xff]  ;;  %v32_v3 = vld [vmem:[%s525_s2 + $0x8] sm:$0xff]  ;;  %vm59_vm2 = vcmask 130048   ;;  %vm439_vm7 = vmmov 0   ;;  %vm349_vm8 = vcmask 31744   ;;  %vm352_vm9 = vcmask 64512  }
   0x2   :  { %142 = vperm.xlu1 %406, %v31_v2   ;;  %39 = vperm.xlu0 %405, %v31_v2   ;;  %v34_v6 = vshrl.u32 %v33_v5, 7  ;;  %v369_v7 = vld [vmem:[%s527_s3] sm:$0xf]   ;;  %s437_s3 = smov 120   ;;  %vm355_vm10 = vcmask 97280  }
   0x3   :  { %v370_v8 = vunpack.c.0.s8 %v369_v7  ;;  %v30_v11 = vld [vmem:[%s528_s1] sm:$0x7]  ;;  %v371_v15 = vunpack.c.1.s8 %v369_v7 }
   0x4   :  { %v139_v9 = vsub.s32 1, %v34_v6  ;;  %v35_v10 = vsub.s32 0, %v34_v6  ;;  %v237_v22 = vsub.s32 2, %v34_v6  ;;  %v409_v1 = vld [vmem:[%s526_s0] sm:$0xff]   ;;  %s441_s0 = smov 4  }
   0x5   :  { %v480_v12 = vcvt.s32.f32 %v370_v8  ;;  %v483_v21 = vcvt.s32.f32 %v371_v15 }
   0x6   :  { %146 = vperm.xlu1 %406, %v32_v3   ;;  %44 = vperm.xlu0 %405, %v32_v3   ;;  %v140_v13 = vrot.slane %v30_v11, %v139_v9  ;;  %v36_v14 = vrot.slane %v30_v11, %v35_v10  ;;  %v238_v33 = vrot.slane %v30_v11, %v237_v22 }
   0x7   :  { %v362_v18 = vadd.f32 -1.0, %v480_v12  ;;  %v363_v31 = vadd.f32 -1.0, %v483_v21 }
   0x9   :  { %v26_v27 = vmul.f32 1e+30, %v362_v18  ;;  %v27_v42 = vmul.f32 1e+30, %v363_v31 }
   0xa   :  { %408 = vset.pattern.permute.xlu1 %v436_v4  ;;  %407 = vset.pattern.permute.xlu0 %v436_v4 }
   0xb   :  { %244 = vperm.xlu1 %408, %v32_v3   ;;  %240 = vperm.xlu0 %407, %v31_v2   ;;  %v438_v2 = vmov 0.0  }
   0xc   :  { %378 = vmatprep.subr.bf16.mxu0 %v438_v2  ;;  %380 = vmatprep.mubr.msk.bf16.mxu0 %vm439_vm7, %v438_v2 }
   0xd   :  { %379 = vmatpush3.bf16.msra.mxu0 %v409_v1  ;;  %384 = vmatprep.subr.bf16.mxu1 %v438_v2 }
   0xe   :  { %390 = vmatprep.subr.bf16.mxu0 %v438_v2  ;;  %386 = vmatprep.mubr.msk.bf16.mxu1 %vm439_vm7, %v438_v2 }
  0x7d   :  { %v143_v16 = vpop.permute.xlu1 %142  ;;  %v40_v17 = vpop.permute.xlu0 %39 }
  0x7e   :  { %v149_v19 = vadd.f32 %v143_v16, %v140_v13  ;;  %v47_v20 = vadd.f32 %v40_v17, %v36_v14 }
  0x80   :  { %vm151_vm0 = vcmp.gt.f32.partialorder %v149_v19, 0.0  ;;  %v153_v23 = vmul.f32 0.2, %v149_v19  ;;  %vm49_vm1 = vcmp.gt.f32.partialorder %v47_v20, 0.0  ;;  %v51_v24 = vmul.f32 0.2, %v47_v20 }
  0x81   :  { %v147_v25 = vpop.permute.xlu1 %146  ;;  %v45_v26 = vpop.permute.xlu0 %44 }
  0x82   :  { %v53_v28 = vsel %vm49_vm1, %v47_v20, %v51_v24  ;;  %v150_v29 = vadd.f32 %v147_v25, %v140_v13  ;;  %v48_v30 = vadd.f32 %v45_v26, %v36_v14  ;;  %v155_v32 = vsel %vm151_vm0, %v149_v19, %v153_v23 }
  0x83   :  { %v55_v34 = vmul.f32 %v53_v28, %v480_v12  ;;  %v157_v43 = vmul.f32 %v155_v32, %v480_v12 }
  0x84   :  { %vm152_vm3 = vcmp.gt.f32.partialorder %v150_v29, 0.0  ;;  %v154_v35 = vmul.f32 0.2, %v150_v29  ;;  %vm50_vm4 = vcmp.gt.f32.partialorder %v48_v30, 0.0  ;;  %v52_v36 = vmul.f32 0.2, %v48_v30 }
  0x85   :  { %v57_v37 = vadd.f32 %v55_v34, %v26_v27  ;;  %v159_v55 = vadd.f32 %v157_v43, %v26_v27 }
  0x86   :  { %v156_v38 = vsel %vm152_vm3, %v150_v29, %v154_v35  ;;  %v54_v39 = vsel %vm50_vm4, %v48_v30, %v52_v36  ;;  %v245_v40 = vpop.permute.xlu1 %244  ;;  %v241_v41 = vpop.permute.xlu0 %240 }
  0x87   :  { %v248_v44 = vadd.f32 %v245_v40, %v238_v33  ;;  %v247_v45 = vadd.f32 %v241_v41, %v238_v33  ;;  %v60_v46 = vsel %vm59_vm2, %v57_v37, -inf  ;;  %v56_v47 = vmul.f32 %v54_v39, %v483_v21 }
  0x88   :  { %61 = vmax.xlane.f32.xlu1 %v60_v46  ;;  %v158_v48 = vmul.f32 %v156_v38, %v483_v21  ;;  %v161_v61 = vsel %vm59_vm2, %v159_v55, -inf }
  0x89   :  { %vm250_vm5 = vcmp.gt.f32.partialorder %v248_v44, 0.0  ;;  %v252_v49 = vmul.f32 0.2, %v248_v44  ;;  %vm249_vm6 = vcmp.gt.f32.partialorder %v247_v45, 0.0  ;;  %v251_v50 = vmul.f32 0.2, %v247_v45 }
  0x8a   :  { %v58_v51 = vadd.f32 %v56_v47, %v27_v42  ;;  %v160_v52 = vadd.f32 %v158_v48, %v27_v42 }
  0x8b   :  { %v254_v53 = vsel %vm250_vm5, %v248_v44, %v252_v49  ;;  %v253_v54 = vsel %vm249_vm6, %v247_v45, %v251_v50 }
  0x8c   :  { %v63_v56 = vsel %vm59_vm2, %v58_v51, -inf  ;;  %v164_v57 = vsel %vm59_vm2, %v160_v52, -inf  ;;  %v256_v58 = vmul.f32 %v254_v53, %v483_v21  ;;  %v255_v59 = vmul.f32 %v253_v54, %v480_v12 }
  0x8d   :  { %64 = vmax.xlane.f32.xlu0 %v63_v56  ;;  %165 = vmax.xlane.f32.xlu1 %v164_v57 }
  0x8e   :  { %v258_v60 = vadd.f32 %v256_v58, %v27_v42  ;;  %v257_v63 = vadd.f32 %v255_v59, %v26_v27 }
  0x90   :  { %v262_v62 = vsel %vm59_vm2, %v258_v60, -inf  ;;  %v259_v0 = vsel %vm59_vm2, %v257_v63, -inf }
  0x91   :  { %162 = vmax.xlane.f32.xlu0 %v161_v61  ;;  %263 = vmax.xlane.f32.xlu1 %v262_v62 }
  0x95   :  { %260 = vmax.xlane.f32.xlu0 %v259_v0 }
  0xa2   :  { %284 = vrot.lane.b32.xlu1 %v409_v1, %s437_s3 }
  0xab   :  { %186 = vrot.lane.b32.xlu0 %v409_v1, %s440_s23 }
 0x111   :  { %v62_v3 = vpop.xlane.xlu1 %61 }
 0x112   :  { %v66_v4 = vsub.f32 %v57_v37, %v62_v3 }
 0x114   :  { %v68_v5 = vmul.f32 1.442695, %v66_v4 }
 0x116   :  { %v65_v6 = vpop.xlane.xlu0 %64  ;;  %v166_v7 = vpop.xlane.xlu1 %165  ;;  %410 = vpow2.f32 %v68_v5 }
 0x117   :  { %v67_v8 = vsub.f32 %v58_v51, %v65_v6  ;;  %v168_v9 = vsub.f32 %v160_v52, %v166_v7 }
 0x119   :  { %v70_v10 = vmul.f32 1.442695, %v67_v8  ;;  %v171_v11 = vmul.f32 1.442695, %v168_v9 }
 0x11a   :  { %v163_v13 = vpop.xlane.xlu0 %162  ;;  %v264_v14 = vpop.xlane.xlu1 %263 }
 0x11b   :  { %412 = vpow2.f32 %v70_v10  ;;  %v167_v15 = vsub.f32 %v159_v55, %v163_v13  ;;  %v266_v16 = vsub.f32 %v258_v60, %v264_v14 }
 0x11c   :  { %414 = vpow2.f32 %v171_v11 }
 0x11d   :  { %v169_v17 = vmul.f32 1.442695, %v167_v15  ;;  %v269_v18 = vmul.f32 1.442695, %v266_v16 }
 0x11e   :  { %v261_v19 = vpop.xlane.xlu0 %260  ;;  %v285_v30 = vpop.permute.xlu1 %284 }
 0x11f   :  { %416 = vpow2.f32 %v169_v17  ;;  %v265_v20 = vsub.f32 %v257_v63, %v261_v19 }
 0x120   :  { %418 = vpow2.f32 %v269_v18 }
 0x121   :  { %v267_v22 = vmul.f32 1.442695, %v265_v20 }
 0x122   :  { %v187_v23 = vpop.permute.xlu0 %186 }
 0x123   :  { %420 = vpow2.f32 %v267_v22  ;;  %385 = vmatpush3.bf16.msra.mxu1 %v187_v23  ;;  %v411_v24 = vpop.eup %410 }
 0x124   :  { %v72_v27 = vmul.f32 %v411_v24, %v480_v12 }
 0x126   :  { %v74_v45 = vsel %vm59_vm2, %v72_v27, 0.0 }
 0x128   :  { %v413_v25 = vpop.eup %412 }
 0x129   :  { %v415_v26 = vpop.eup %414  ;;  %v73_v28 = vmul.f32 %v413_v25, %v483_v21 }
 0x12a   :  { %v174_v29 = vmul.f32 %v415_v26, %v483_v21 }
 0x12b   :  { %v84_v31 = vpack.c.bf16 %v73_v28, %v72_v27  ;;  %v77_v44 = vsel %vm59_vm2, %v73_v28, 0.0 }
 0x12c   :  { %v417_v32 = vpop.eup %416  ;;  %v178_v33 = vsel %vm59_vm2, %v174_v29, 0.0 }
 0x12d   :  { %v419_v34 = vpop.eup %418  ;;  %179 = vadd.xlane.f32.xlu0 %v178_v33  ;;  %381 = vmatmul.mubr.msk.bf16.vlgmr.msra.gmra.mxu0 %vm59_vm2, %v84_v31  ;;  %v173_v35 = vmul.f32 %v417_v32, %v480_v12 }
 0x12e   :  { %391 = vmatpush3.bf16.msra.mxu0 %v285_v30  ;;  %392 = vmatprep.mubr.msk.bf16.mxu0 %vm439_vm7, %v438_v2  ;;  %v272_v38 = vmul.f32 %v419_v34, %v483_v21 }
 0x12f   :  { %v175_v36 = vsel %vm59_vm2, %v173_v35, 0.0  ;;  %v185_v37 = vpack.c.bf16 %v174_v29, %v173_v35 }
 0x130   :  { %v421_v39 = vpop.eup %420  ;;  %176 = vadd.xlane.f32.xlu1 %v175_v36  ;;  %v276_v41 = vsel %vm59_vm2, %v272_v38, 0.0 }
 0x131   :  { %387 = vmatmul.mubr.msk.bf16.vlgmr.msra.gmra.mxu1 %vm59_vm2, %v185_v37  ;;  %v271_v40 = vmul.f32 %v421_v39, %v480_v12 }
 0x133   :  { %v273_v42 = vsel %vm59_vm2, %v271_v40, 0.0  ;;  %v283_v43 = vpack.c.bf16 %v272_v38, %v271_v40 }
 0x134   :  { %277 = vadd.xlane.f32.xlu1 %v276_v41  ;;  %274 = vadd.xlane.f32.xlu0 %v273_v42 }
 0x135   :  { %393 = vmatmul.mubr.msk.bf16.vlgmr.msra.gmra.mxu0 %vm59_vm2, %v283_v43 }
 0x138   :  { %78 = vadd.xlane.f32.xlu1 %v77_v44  ;;  %75 = vadd.xlane.f32.xlu0 %v74_v45 }
 0x1b6   :  { %v180_v47 = vpop.xlane.xlu0 %179 }
 0x1b7   :  { %v182_v48 = vmax.f32 %v180_v47, 1e-20 }
 0x1b9   :  { %v177_v21 = vpop.xlane.xlu1 %176 }
 0x1ba   :  { %v181_v46 = vmax.f32 %v177_v21, 1e-20 }
 0x1bc   :  { %422 = vrcp.f32 %v181_v46 }
 0x1bd   :  { %v278_v12 = vpop.xlane.xlu1 %277  ;;  %v275_v49 = vpop.xlane.xlu0 %274  ;;  %424 = vrcp.f32 %v182_v48 }
 0x1be   :  { %v280_v50 = vmax.f32 %v278_v12, 1e-20  ;;  %v279_v51 = vmax.f32 %v275_v49, 1e-20 }
 0x1c0   :  { %426 = vrcp.f32 %v280_v50 }
 0x1c1   :  { %428 = vrcp.f32 %v279_v51  ;;  %v79_v8 = vpop.xlane.xlu1 %78  ;;  %v76_v9 = vpop.xlane.xlu0 %75 }
 0x1c2   :  { %v81_v10 = vmax.f32 %v79_v8, 1e-20  ;;  %v80_v11 = vmax.f32 %v76_v9, 1e-20 }
 0x1c4   :  { %430 = vrcp.f32 %v81_v10 }
 0x1c5   :  { %432 = vrcp.f32 %v80_v11 }
 0x1c9   :  { %v423_v54 = vpop.eup %422 }
 0x1ca   :  { %v425_v60 = vpop.eup %424 }
 0x1cd   :  { %v427_v2 = vpop.eup %426 }
 0x1ce   :  { %v429_v3 = vpop.eup %428 }
 0x1d1   :  { %v431_v13 = vpop.eup %430 }
 0x1d2   :  { %v433_v16 = vpop.eup %432 }
 0x1ed   :  { %v128_v52 = vpop.f32.mrf.mxu0 }
 0x1ee   :  { %v135_v17 = vmul.f32 %v433_v16, %v128_v52 }
 0x1ef   :  { %v382_v53 = vpop.f32.mrf.mxu0 }
 0x1f1   :  { %v131_v55 = vpop.f32.mrf.mxu0  ;;  %v226_v56 = vpop.f32.mrf.mxu1 }
 0x1f2   :  { %v233_v57 = vmul.f32 %v423_v54, %v226_v56  ;;  %v136_v18 = vmul.f32 %v431_v13, %v131_v55 }
 0x1f3   :  { %v383_v58 = vpop.f32.mrf.mxu0  ;;  %v388_v59 = vpop.f32.mrf.mxu1 }
 0x1f4   :  { %335 = vrot.lane.b32.xlu0 %v233_v57, %s441_s0 }
 0x1f5   :  { %v229_v61 = vpop.f32.mrf.mxu1  ;;  %v324_v62 = vpop.f32.mrf.mxu0 }
 0x1f6   :  { %v234_v63 = vmul.f32 %v425_v60, %v229_v61  ;;  %v331_v5 = vmul.f32 %v429_v3, %v324_v62 }
 0x1f7   :  { %v389_v0 = vpop.f32.mrf.mxu1  ;;  %v394_v1 = vpop.f32.mrf.mxu0 }
 0x1f8   :  { %337 = vrot.lane.b32.xlu1 %v234_v63, %s441_s0 }
 0x1f9   :  { %v327_v4 = vpop.f32.mrf.mxu0 }
 0x1fa   :  { %v332_v6 = vmul.f32 %v427_v2, %v327_v4 }
 0x1fb   :  { %v395_v7 = vpop.f32.mrf.mxu0 }
 0x1fc   :  { %343 = vrot.lane.b32.xlu1 %v331_v5, %s442_s24  ;;  %345 = vrot.lane.b32.xlu0 %v332_v6, %s442_s24 }
 0x266   :  { %v336_v14 = vpop.permute.xlu0 %335 }
 0x267   :  { %v350_v19 = vsel %vm349_vm8, %v135_v17, %v336_v14 }
 0x26a   :  { %v338_v15 = vpop.permute.xlu1 %337 }
 0x26b   :  { %v351_v20 = vsel %vm349_vm8, %v136_v18, %v338_v15 }
 0x26e   :  { %v344_v22 = vpop.permute.xlu1 %343  ;;  %v346_v23 = vpop.permute.xlu0 %345 }
 0x26f   :  { %v353_v24 = vsel %vm352_vm9, %v350_v19, %v344_v22  ;;  %v354_v25 = vsel %vm352_vm9, %v351_v20, %v346_v23 }
 0x270   :  { %356 = vst.msk [vmem:[%s529_s4] sm:$0xff] %vm355_vm10, %v353_v24  ;;  %357 = vst.msk [vmem:[%s529_s4 + $0x8] sm:$0xff] %vm355_vm10, %v354_v25 }

</bundles_post_ra>
